<compile_context>
chip_gen: v5e
topology: v5e:2x2
jax: 0.10.0
libtpu: 0.0.40
codegen_flags: <defaults>
</compile_context>

<pallas_src>
import functools

import jax
import jax.numpy as jnp
from jax.experimental import pallas as pl
from jax.experimental.pallas import tpu as pltpu

P = 128  # lane width every packed slab is padded to


def _relu(x):
    return jnp.maximum(x, 0.0)


# --------------------------------------------------------------------------
# Kernel: single invocation, everything resident in VMEM.
# --------------------------------------------------------------------------
def nmr_decoder_kernel(row_ref, colt_ref, wm_ref, wd_ref, bm_ref, bd_ref,
                       out_ref, *, Ip, K, O, D):
    mm = functools.partial(jnp.dot, preferred_element_type=jnp.float32)

    row = row_ref[...]          # (M, Ip)
    colT = colt_ref[...]        # (P, Dp)  zero rows >= i_dim, zero cols >= D (pre-bias)
    BM = bm_ref[...]            # (8, P)   m-side biases, one row per layer
    BD = bd_ref[...]            # (P, 8)   d-side biases, one column per layer

    # Static sublane offsets inside the packed weight slabs (all 8-aligned).
    r0, r1 = 0, Ip
    r2, r3, r4, r5 = r1 + P, r1 + 2 * P, r1 + 3 * P, r1 + 4 * P
    s = [l * P for l in range(6)]

    # ---- m side: all K relations fused along lanes, full 128-lane operands ----
    m = _relu(mm(row, wm_ref[r0:r1, :]) + BM[0])
    m = _relu(mm(m,   wm_ref[r1:r2, :]) + BM[1])
    m = _relu(mm(m,   wm_ref[r2:r3, :]) + BM[2])
    m = _relu(mm(m,   wm_ref[r3:r4, :]) + BM[3])
    m = _relu(mm(m,   wm_ref[r4:r5, :]) + BM[4])          # (M, P); lanes >= K*O are 0

    # ---- d side in transposed layout: dT = relu(W^T @ dT_prev + b) ----
    dT = _relu(mm(wd_ref[s[0]:s[1], :], colT) + BD[:, 0:1])
    dT = _relu(mm(wd_ref[s[1]:s[2], :], dT)   + BD[:, 1:2])
    dT = _relu(mm(wd_ref[s[2]:s[3], :], dT)   + BD[:, 2:3])
    dT = _relu(mm(wd_ref[s[3]:s[4], :], dT)   + BD[:, 3:4])
    dT = _relu(mm(wd_ref[s[4]:s[5], :], dT)   + BD[:, 4:5])  # (P, Dp); rows >= K*O are 0

    # ---- per-relation bilinear score, natural (C,N)-form matmuls ----
    for k in range(K):
        mk = m[:, k * O:(k + 1) * O]       # (M, O)
        dk = dT[k * O:(k + 1) * O, :]      # (O, Dp) == d_k^T (lanes >= D are junk)
        out_ref[k] = mm(mk, dk)[:, :D]     # (M, D) stored directly; no wrapper slice


# --------------------------------------------------------------------------
# One-time parameter packing (layout plumbing, outside the hot path)
# --------------------------------------------------------------------------
def pack_params(params, *, num_relations):
    K = num_relations
    I, H = params["wm1"].shape[1], params["wm1"].shape[2]
    O = params["wm3"].shape[2]
    KH, KO = K * H, K * O
    # TODO(synk): tile / un-fuse relations when fused widths exceed 128 lanes.
    assert KH <= P and KO <= P and I <= P, "demo packing requires fused widths <= 128"
    Ip = ((I + 7) // 8) * 8

    f32 = jnp.float32

    def pad2(x, rows, cols):
        return jnp.pad(x, ((0, rows - x.shape[0]), (0, cols - x.shape[1])))

    def concat_cols(w):                    # (K, a, b) -> (a, K*b)
        return jnp.concatenate([w[k] for k in range(K)], axis=1)

    def block_diag(blocks):                # K x (a, b) -> (K*a, K*b)
        a, b = blocks[0].shape
        out = jnp.zeros((len(blocks) * a, len(blocks) * b), blocks[0].dtype)
        for k, blk in enumerate(blocks):
            out = out.at[k * a:(k + 1) * a, k * b:(k + 1) * b].set(blk)
        return out

    def concat_bias(b):                    # (K, 1, h) -> (1, K*h)
        return jnp.concatenate([b[k] for k in range(K)], axis=1)

    # m-side slab: natural orientation (activation features live on lanes).
    wm_slab = jnp.concatenate([
        pad2(concat_cols(params["wm1"]), Ip, P),                        # (Ip, P)
        pad2(block_diag([params["wm2"][k] for k in range(K)]), P, P),   # (P, P)
        pad2(block_diag([params["wm3"][k] for k in range(K)]), P, P),
        pad2(block_diag([params["gm1w"]] * K), P, P),
        pad2(block_diag([params["gm2w"]] * K), P, P),
    ], axis=0)                                                          # (Ip+4P, P)

    # d-side slab: pre-transposed so the kernel computes dT = W^T @ dT_prev.
    wd_slab = jnp.concatenate([
        pad2(jnp.concatenate([params["wd1"][k].T for k in range(K)], axis=0), P, P),
        pad2(block_diag([params["wd2"][k].T for k in range(K)]), P, P),
        pad2(block_diag([params["wd3"][k].T for k in range(K)]), P, P),
        pad2(block_diag([params["gd1w"].T] * K), P, P),
        pad2(block_diag([params["gd2w"].T] * K), P, P),
    ], axis=0)                                                          # (5P, P)

    bm_slab = jnp.concatenate([
        pad2(concat_bias(params["bm1"]), 1, P),
        pad2(concat_bias(params["bm2"]), 1, P),
        pad2(concat_bias(params["bm3"]), 1, P),
        pad2(jnp.tile(params["gm1b"], (1, K)), 1, P),
        pad2(jnp.tile(params["gm2b"], (1, K)), 1, P),
        jnp.zeros((3, P), f32),
    ], axis=0)                                                          # (8, P)

    bd_slab = jnp.concatenate([
        pad2(concat_bias(params["bd1"]).T, P, 1),
        pad2(concat_bias(params["bd2"]).T, P, 1),
        pad2(concat_bias(params["bd3"]).T, P, 1),
        pad2(jnp.tile(params["gd1b"], (1, K)).T, P, 1),
        pad2(jnp.tile(params["gd2b"], (1, K)).T, P, 1),
        jnp.zeros((P, 3), f32),
    ], axis=1)                                                          # (P, 8)

    dims = dict(I=I, Ip=Ip, H=H, O=O, K=K, KH=KH, KO=KO)
    return wm_slab, wd_slab, bm_slab, bd_slab, dims


# --------------------------------------------------------------------------
# Wrapper
# --------------------------------------------------------------------------
def nmr_decoder(row, col, wm_slab, wd_slab, bm_slab, bd_slab, dims):
    M = row.shape[0]
    D = col.shape[0]
    I, Ip, H, O, K = dims["I"], dims["Ip"], dims["H"], dims["O"], dims["K"]

    # Lane-dense d-side activations: feed col transposed & zero-padded so every
    # d-layer matmul and the score matmul run on full 128-lane columns.
    Dp = ((D + 127) // 128) * 128
    rowp = jnp.pad(row, ((0, 0), (0, Ip - I)))
    colT = jnp.pad(col.T, ((0, P - I), (0, Dp - D)))        # (P, Dp)

    kernel = functools.partial(nmr_decoder_kernel, Ip=Ip, K=K, O=O, D=D)

    flops = int(2 * (K * (M + D) * (I * H + H * H + H * O + 2 * O * O)
                     + K * M * O * Dp))
    bytes_accessed = int(4 * (rowp.size + colT.size + wm_slab.size + wd_slab.size
                              + bm_slab.size + bd_slab.size + K * M * D))

    vmem = pl.BlockSpec(memory_space=pltpu.MemorySpace.VMEM)
    return pl.pallas_call(
        kernel,
        out_shape=jax.ShapeDtypeStruct((K, M, D), jnp.float32),
        in_specs=[vmem] * 6,                # whole operands resident in VMEM,
        out_specs=vmem,                     # no grid -> no double-buffering
        cost_estimate=pl.CostEstimate(flops=flops, transcendentals=0,
                                      bytes_accessed=bytes_accessed),
    )(rowp, colT, wm_slab, wd_slab, bm_slab, bd_slab)


# --------------------------------------------------------------------------
# Pure-JAX reference mirroring the PyTorch forward (unpacked params)
# --------------------------------------------------------------------------
def nmr_decoder_ref(row, col, params, *, num_relations):
    outs = []
    for k in range(num_relations):
        m = _relu(row @ params["wm1"][k] + params["bm1"][k])
        m = _relu(m @ params["wm2"][k] + params["bm2"][k])
        m = _relu(m @ params["wm3"][k] + params["bm3"][k])
        d = _relu(col @ params["wd1"][k] + params["bd1"][k])
        d = _relu(d @ params["wd2"][k] + params["bd2"][k])
        d = _relu(d @ params["wd3"][k] + params["bd3"][k])
        m = _relu(m @ params["gm1w"] + params["gm1b"])
        m = _relu(m @ params["gm2w"] + params["gm2b"])
        d = _relu(d @ params["gd1w"] + params["gd1b"])
        d = _relu(d @ params["gd2w"] + params["gd2b"])
        outs.append(m @ d.T)
    return jnp.stack(outs, axis=0)


def init_params(key, *, num_relations, i_dim, h_dim, o_dim):
    """Deterministic synthetic parameters (shapes follow the nn.Module)."""
    keys = jax.random.split(key, 32)
    it = iter(keys)

    def lin(k, fan_in, fan_out, stacked=False):
        bound = 1.0 / jnp.sqrt(jnp.float32(fan_in))
        kw, kb = jax.random.split(k)
        wshape = (num_relations, fan_in, fan_out) if stacked else (fan_in, fan_out)
        bshape = (num_relations, 1, fan_out) if stacked else (1, fan_out)
        w = jax.random.uniform(kw, wshape, jnp.float32, -bound, bound)
        b = jax.random.uniform(kb, bshape, jnp.float32, -bound, bound)
        return w, b

    p = {}
    p["wm1"], p["bm1"] = lin(next(it), i_dim, h_dim, stacked=True)
    p["wm2"], p["bm2"] = lin(next(it), h_dim, h_dim, stacked=True)
    p["wm3"], p["bm3"] = lin(next(it), h_dim, o_dim, stacked=True)
    p["wd1"], p["bd1"] = lin(next(it), i_dim, h_dim, stacked=True)
    p["wd2"], p["bd2"] = lin(next(it), h_dim, h_dim, stacked=True)
    p["wd3"], p["bd3"] = lin(next(it), h_dim, o_dim, stacked=True)
    p["gm1w"], p["gm1b"] = lin(next(it), o_dim, o_dim)
    p["gm2w"], p["gm2b"] = lin(next(it), o_dim, o_dim)
    p["gd1w"], p["gd1b"] = lin(next(it), o_dim, o_dim)
    p["gd2w"], p["gd2b"] = lin(next(it), o_dim, o_dim)
    return p


if __name__ == "__main__":
    num_relations = 3
    M, D = 16, 24            # inputs_row rows, inputs_col rows
    i_dim, h_dim, o_dim = 32, 32, 16

    key = jax.random.PRNGKey(0)
    k_row, k_col, k_par = jax.random.split(key, 3)
    inputs_row = jax.random.normal(k_row, (M, i_dim), jnp.float32)
    inputs_col = jax.random.normal(k_col, (D, i_dim), jnp.float32)
    params = init_params(
        k_par, num_relations=num_relations, i_dim=i_dim, h_dim=h_dim, o_dim=o_dim
    )

    # One-time packing of parameters into TPU-friendly, fully lane-padded slabs.
    wm_slab, wd_slab, bm_slab, bd_slab, dims = pack_params(
        params, num_relations=num_relations
    )

    out = nmr_decoder(inputs_row, inputs_col, wm_slab, wd_slab, bm_slab,
                      bd_slab, dims)
    out = jax.block_until_ready(out)

    ref = nmr_decoder_ref(inputs_row, inputs_col, params,
                          num_relations=num_relations)
    assert out.shape == (num_relations, M, D)
    assert jnp.allclose(out, ref, atol=1e-4, rtol=1e-4), "mismatch vs reference"

    print("KERNEL_OK")
</pallas_src>

<mosaic_0001>
module attributes {stable_mosaic.version = 11 : i64} {
  func.func @nmr_decoder_kernel(%arg0: memref<16x32xf32, #tpu.memory_space<vmem>>, %arg1: memref<128x128xf32, #tpu.memory_space<vmem>>, %arg2: memref<544x128xf32, #tpu.memory_space<vmem>>, %arg3: memref<640x128xf32, #tpu.memory_space<vmem>>, %arg4: memref<8x128xf32, #tpu.memory_space<vmem>>, %arg5: memref<128x8xf32, #tpu.memory_space<vmem>>, %arg6: memref<3x16x24xf32, #tpu.memory_space<vmem>>) attributes {dimension_semantics = [], scalar_prefetch = 0 : i64, scratch_operands = 0 : i64, tpu.core_type = #tpu.core_type<tc>} {
    %c0 = arith.constant 0 : index
    %c0_0 = arith.constant 0 : index
    %0 = vector.load %arg0[%c0, %c0_0] : memref<16x32xf32, #tpu.memory_space<vmem>>, vector<16x32xf32>
    %c0_1 = arith.constant 0 : index
    %c0_2 = arith.constant 0 : index
    %1 = vector.load %arg1[%c0_1, %c0_2] : memref<128x128xf32, #tpu.memory_space<vmem>>, vector<128x128xf32>
    %c0_3 = arith.constant 0 : index
    %c0_4 = arith.constant 0 : index
    %2 = vector.load %arg4[%c0_3, %c0_4] : memref<8x128xf32, #tpu.memory_space<vmem>>, vector<8x128xf32>
    %c0_5 = arith.constant 0 : index
    %c0_6 = arith.constant 0 : index
    %3 = vector.load %arg5[%c0_5, %c0_6] : memref<128x8xf32, #tpu.memory_space<vmem>>, vector<128x8xf32>
    %c0_7 = arith.constant 0 : index
    %c0_8 = arith.constant 0 : index
    %4 = vector.load %arg2[%c0_7, %c0_8] : memref<544x128xf32, #tpu.memory_space<vmem>>, vector<32x128xf32>
    %cst = arith.constant dense<0.000000e+00> : vector<16x128xf32>
    %5 = tpu.matmul %0, %4, %cst {dimension_numbers = #tpu.dot_dimension_numbers<[1], [0], [0], [1], [0, 0, 1, 1], [], []>} : vector<16x32xf32>, vector<32x128xf32>, vector<16x128xf32> -> vector<16x128xf32>
    %6 = vector.extract_strided_slice %2 {offsets = [0, 0], sizes = [1, 128], strides = [1, 1]} : vector<8x128xf32> to vector<1x128xf32>
    %7 = vector.shape_cast %6 : vector<1x128xf32> to vector<128xf32>
    %8 = vector.shape_cast %7 : vector<128xf32> to vector<1x128xf32>
    %9 = vector.broadcast %8 : vector<1x128xf32> to vector<16x128xf32>
    %10 = arith.addf %5, %9 : vector<16x128xf32>
    %cst_9 = arith.constant 0.000000e+00 : f32
    %11 = vector.broadcast %cst_9 : f32 to vector<16x128xf32>
    %12 = arith.maximumf %10, %11 : vector<16x128xf32>
    %c32 = arith.constant 32 : index
    %c0_10 = arith.constant 0 : index
    %13 = vector.load %arg2[%c32, %c0_10] : memref<544x128xf32, #tpu.memory_space<vmem>>, vector<128x128xf32>
    %cst_11 = arith.constant dense<0.000000e+00> : vector<16x128xf32>
    %14 = tpu.matmul %12, %13, %cst_11 {dimension_numbers = #tpu.dot_dimension_numbers<[1], [0], [0], [1], [0, 0, 1, 1], [], []>} : vector<16x128xf32>, vector<128x128xf32>, vector<16x128xf32> -> vector<16x128xf32>
    %15 = vector.extract_strided_slice %2 {offsets = [1, 0], sizes = [1, 128], strides = [1, 1]} : vector<8x128xf32> to vector<1x128xf32>
    %16 = vector.shape_cast %15 : vector<1x128xf32> to vector<128xf32>
    %17 = vector.shape_cast %16 : vector<128xf32> to vector<1x128xf32>
    %18 = vector.broadcast %17 : vector<1x128xf32> to vector<16x128xf32>
    %19 = arith.addf %14, %18 : vector<16x128xf32>
    %cst_12 = arith.constant 0.000000e+00 : f32
    %20 = vector.broadcast %cst_12 : f32 to vector<16x128xf32>
    %21 = arith.maximumf %19, %20 : vector<16x128xf32>
    %c160 = arith.constant 160 : index
    %c0_13 = arith.constant 0 : index
    %22 = vector.load %arg2[%c160, %c0_13] : memref<544x128xf32, #tpu.memory_space<vmem>>, vector<128x128xf32>
    %cst_14 = arith.constant dense<0.000000e+00> : vector<16x128xf32>
    %23 = tpu.matmul %21, %22, %cst_14 {dimension_numbers = #tpu.dot_dimension_numbers<[1], [0], [0], [1], [0, 0, 1, 1], [], []>} : vector<16x128xf32>, vector<128x128xf32>, vector<16x128xf32> -> vector<16x128xf32>
    %24 = vector.extract_strided_slice %2 {offsets = [2, 0], sizes = [1, 128], strides = [1, 1]} : vector<8x128xf32> to vector<1x128xf32>
    %25 = vector.shape_cast %24 : vector<1x128xf32> to vector<128xf32>
    %26 = vector.shape_cast %25 : vector<128xf32> to vector<1x128xf32>
    %27 = vector.broadcast %26 : vector<1x128xf32> to vector<16x128xf32>
    %28 = arith.addf %23, %27 : vector<16x128xf32>
    %cst_15 = arith.constant 0.000000e+00 : f32
    %29 = vector.broadcast %cst_15 : f32 to vector<16x128xf32>
    %30 = arith.maximumf %28, %29 : vector<16x128xf32>
    %c288 = arith.constant 288 : index
    %c0_16 = arith.constant 0 : index
    %31 = vector.load %arg2[%c288, %c0_16] : memref<544x128xf32, #tpu.memory_space<vmem>>, vector<128x128xf32>
    %cst_17 = arith.constant dense<0.000000e+00> : vector<16x128xf32>
    %32 = tpu.matmul %30, %31, %cst_17 {dimension_numbers = #tpu.dot_dimension_numbers<[1], [0], [0], [1], [0, 0, 1, 1], [], []>} : vector<16x128xf32>, vector<128x128xf32>, vector<16x128xf32> -> vector<16x128xf32>
    %33 = vector.extract_strided_slice %2 {offsets = [3, 0], sizes = [1, 128], strides = [1, 1]} : vector<8x128xf32> to vector<1x128xf32>
    %34 = vector.shape_cast %33 : vector<1x128xf32> to vector<128xf32>
    %35 = vector.shape_cast %34 : vector<128xf32> to vector<1x128xf32>
    %36 = vector.broadcast %35 : vector<1x128xf32> to vector<16x128xf32>
    %37 = arith.addf %32, %36 : vector<16x128xf32>
    %cst_18 = arith.constant 0.000000e+00 : f32
    %38 = vector.broadcast %cst_18 : f32 to vector<16x128xf32>
    %39 = arith.maximumf %37, %38 : vector<16x128xf32>
    %c416 = arith.constant 416 : index
    %c0_19 = arith.constant 0 : index
    %40 = vector.load %arg2[%c416, %c0_19] : memref<544x128xf32, #tpu.memory_space<vmem>>, vector<128x128xf32>
    %cst_20 = arith.constant dense<0.000000e+00> : vector<16x128xf32>
    %41 = tpu.matmul %39, %40, %cst_20 {dimension_numbers = #tpu.dot_dimension_numbers<[1], [0], [0], [1], [0, 0, 1, 1], [], []>} : vector<16x128xf32>, vector<128x128xf32>, vector<16x128xf32> -> vector<16x128xf32>
    %42 = vector.extract_strided_slice %2 {offsets = [4, 0], sizes = [1, 128], strides = [1, 1]} : vector<8x128xf32> to vector<1x128xf32>
    %43 = vector.shape_cast %42 : vector<1x128xf32> to vector<128xf32>
    %44 = vector.shape_cast %43 : vector<128xf32> to vector<1x128xf32>
    %45 = vector.broadcast %44 : vector<1x128xf32> to vector<16x128xf32>
    %46 = arith.addf %41, %45 : vector<16x128xf32>
    %cst_21 = arith.constant 0.000000e+00 : f32
    %47 = vector.broadcast %cst_21 : f32 to vector<16x128xf32>
    %48 = arith.maximumf %46, %47 : vector<16x128xf32>
    %c0_22 = arith.constant 0 : index
    %c0_23 = arith.constant 0 : index
    %49 = vector.load %arg3[%c0_22, %c0_23] : memref<640x128xf32, #tpu.memory_space<vmem>>, vector<128x128xf32>
    %cst_24 = arith.constant dense<0.000000e+00> : vector<128x128xf32>
    %50 = tpu.matmul %49, %1, %cst_24 {dimension_numbers = #tpu.dot_dimension_numbers<[1], [0], [0], [1], [0, 0, 1, 1], [], []>} : vector<128x128xf32>, vector<128x128xf32>, vector<128x128xf32> -> vector<128x128xf32>
    %51 = vector.extract_strided_slice %3 {offsets = [0, 0], sizes = [128, 1], strides = [1, 1]} : vector<128x8xf32> to vector<128x1xf32>
    %52 = vector.broadcast %51 : vector<128x1xf32> to vector<128x128xf32>
    %53 = arith.addf %50, %52 : vector<128x128xf32>
    %cst_25 = arith.constant 0.000000e+00 : f32
    %54 = vector.broadcast %cst_25 : f32 to vector<128x128xf32>
    %55 = arith.maximumf %53, %54 : vector<128x128xf32>
    %c128 = arith.constant 128 : index
    %c0_26 = arith.constant 0 : index
    %56 = vector.load %arg3[%c128, %c0_26] : memref<640x128xf32, #tpu.memory_space<vmem>>, vector<128x128xf32>
    %cst_27 = arith.constant dense<0.000000e+00> : vector<128x128xf32>
    %57 = tpu.matmul %56, %55, %cst_27 {dimension_numbers = #tpu.dot_dimension_numbers<[1], [0], [0], [1], [0, 0, 1, 1], [], []>} : vector<128x128xf32>, vector<128x128xf32>, vector<128x128xf32> -> vector<128x128xf32>
    %58 = vector.extract_strided_slice %3 {offsets = [0, 1], sizes = [128, 1], strides = [1, 1]} : vector<128x8xf32> to vector<128x1xf32>
    %59 = vector.broadcast %58 : vector<128x1xf32> to vector<128x128xf32>
    %60 = arith.addf %57, %59 : vector<128x128xf32>
    %cst_28 = arith.constant 0.000000e+00 : f32
    %61 = vector.broadcast %cst_28 : f32 to vector<128x128xf32>
    %62 = arith.maximumf %60, %61 : vector<128x128xf32>
    %c256 = arith.constant 256 : index
    %c0_29 = arith.constant 0 : index
    %63 = vector.load %arg3[%c256, %c0_29] : memref<640x128xf32, #tpu.memory_space<vmem>>, vector<128x128xf32>
    %cst_30 = arith.constant dense<0.000000e+00> : vector<128x128xf32>
    %64 = tpu.matmul %63, %62, %cst_30 {dimension_numbers = #tpu.dot_dimension_numbers<[1], [0], [0], [1], [0, 0, 1, 1], [], []>} : vector<128x128xf32>, vector<128x128xf32>, vector<128x128xf32> -> vector<128x128xf32>
    %65 = vector.extract_strided_slice %3 {offsets = [0, 2], sizes = [128, 1], strides = [1, 1]} : vector<128x8xf32> to vector<128x1xf32>
    %66 = vector.broadcast %65 : vector<128x1xf32> to vector<128x128xf32>
    %67 = arith.addf %64, %66 : vector<128x128xf32>
    %cst_31 = arith.constant 0.000000e+00 : f32
    %68 = vector.broadcast %cst_31 : f32 to vector<128x128xf32>
    %69 = arith.maximumf %67, %68 : vector<128x128xf32>
    %c384 = arith.constant 384 : index
    %c0_32 = arith.constant 0 : index
    %70 = vector.load %arg3[%c384, %c0_32] : memref<640x128xf32, #tpu.memory_space<vmem>>, vector<128x128xf32>
    %cst_33 = arith.constant dense<0.000000e+00> : vector<128x128xf32>
    %71 = tpu.matmul %70, %69, %cst_33 {dimension_numbers = #tpu.dot_dimension_numbers<[1], [0], [0], [1], [0, 0, 1, 1], [], []>} : vector<128x128xf32>, vector<128x128xf32>, vector<128x128xf32> -> vector<128x128xf32>
    %72 = vector.extract_strided_slice %3 {offsets = [0, 3], sizes = [128, 1], strides = [1, 1]} : vector<128x8xf32> to vector<128x1xf32>
    %73 = vector.broadcast %72 : vector<128x1xf32> to vector<128x128xf32>
    %74 = arith.addf %71, %73 : vector<128x128xf32>
    %cst_34 = arith.constant 0.000000e+00 : f32
    %75 = vector.broadcast %cst_34 : f32 to vector<128x128xf32>
    %76 = arith.maximumf %74, %75 : vector<128x128xf32>
    %c512 = arith.constant 512 : index
    %c0_35 = arith.constant 0 : index
    %77 = vector.load %arg3[%c512, %c0_35] : memref<640x128xf32, #tpu.memory_space<vmem>>, vector<128x128xf32>
    %cst_36 = arith.constant dense<0.000000e+00> : vector<128x128xf32>
    %78 = tpu.matmul %77, %76, %cst_36 {dimension_numbers = #tpu.dot_dimension_numbers<[1], [0], [0], [1], [0, 0, 1, 1], [], []>} : vector<128x128xf32>, vector<128x128xf32>, vector<128x128xf32> -> vector<128x128xf32>
    %79 = vector.extract_strided_slice %3 {offsets = [0, 4], sizes = [128, 1], strides = [1, 1]} : vector<128x8xf32> to vector<128x1xf32>
    %80 = vector.broadcast %79 : vector<128x1xf32> to vector<128x128xf32>
    %81 = arith.addf %78, %80 : vector<128x128xf32>
    %cst_37 = arith.constant 0.000000e+00 : f32
    %82 = vector.broadcast %cst_37 : f32 to vector<128x128xf32>
    %83 = arith.maximumf %81, %82 : vector<128x128xf32>
    %84 = vector.extract_strided_slice %48 {offsets = [0, 0], sizes = [16, 16], strides = [1, 1]} : vector<16x128xf32> to vector<16x16xf32>
    %85 = vector.extract_strided_slice %83 {offsets = [0, 0], sizes = [16, 128], strides = [1, 1]} : vector<128x128xf32> to vector<16x128xf32>
    %cst_38 = arith.constant dense<0.000000e+00> : vector<16x128xf32>
    %86 = tpu.matmul %84, %85, %cst_38 {dimension_numbers = #tpu.dot_dimension_numbers<[1], [0], [0], [1], [0, 0, 1, 1], [], []>} : vector<16x16xf32>, vector<16x128xf32>, vector<16x128xf32> -> vector<16x128xf32>
    %87 = vector.extract_strided_slice %86 {offsets = [0, 0], sizes = [16, 24], strides = [1, 1]} : vector<16x128xf32> to vector<16x24xf32>
    %c0_39 = arith.constant 0 : index
    %c0_40 = arith.constant 0 : index
    %c0_41 = arith.constant 0 : index
    %88 = vector.load %arg6[%c0_39, %c0_40, %c0_41] : memref<3x16x24xf32, #tpu.memory_space<vmem>>, vector<1x16x24xf32>
    %89 = vector.shape_cast %88 : vector<1x16x24xf32> to vector<16x24xf32>
    %90 = vector.shape_cast %87 : vector<16x24xf32> to vector<1x16x24xf32>
    tpu.vector_store %arg6[%c0_39, %c0_40, %c0_41], %90 {strides = array<i32>} : memref<3x16x24xf32, #tpu.memory_space<vmem>>, vector<1x16x24xf32>,
    %91 = vector.extract_strided_slice %48 {offsets = [0, 16], sizes = [16, 16], strides = [1, 1]} : vector<16x128xf32> to vector<16x16xf32>
    %92 = vector.extract_strided_slice %83 {offsets = [16, 0], sizes = [16, 128], strides = [1, 1]} : vector<128x128xf32> to vector<16x128xf32>
    %cst_42 = arith.constant dense<0.000000e+00> : vector<16x128xf32>
    %93 = tpu.matmul %91, %92, %cst_42 {dimension_numbers = #tpu.dot_dimension_numbers<[1], [0], [0], [1], [0, 0, 1, 1], [], []>} : vector<16x16xf32>, vector<16x128xf32>, vector<16x128xf32> -> vector<16x128xf32>
    %94 = vector.extract_strided_slice %93 {offsets = [0, 0], sizes = [16, 24], strides = [1, 1]} : vector<16x128xf32> to vector<16x24xf32>
    %c1 = arith.constant 1 : index
    %c0_43 = arith.constant 0 : index
    %c0_44 = arith.constant 0 : index
    %95 = vector.load %arg6[%c1, %c0_43, %c0_44] : memref<3x16x24xf32, #tpu.memory_space<vmem>>, vector<1x16x24xf32>
    %96 = vector.shape_cast %95 : vector<1x16x24xf32> to vector<16x24xf32>
    %97 = vector.shape_cast %94 : vector<16x24xf32> to vector<1x16x24xf32>
    tpu.vector_store %arg6[%c1, %c0_43, %c0_44], %97 {strides = array<i32>} : memref<3x16x24xf32, #tpu.memory_space<vmem>>, vector<1x16x24xf32>,
    %98 = vector.extract_strided_slice %48 {offsets = [0, 32], sizes = [16, 16], strides = [1, 1]} : vector<16x128xf32> to vector<16x16xf32>
    %99 = vector.extract_strided_slice %83 {offsets = [32, 0], sizes = [16, 128], strides = [1, 1]} : vector<128x128xf32> to vector<16x128xf32>
    %cst_45 = arith.constant dense<0.000000e+00> : vector<16x128xf32>
    %100 = tpu.matmul %98, %99, %cst_45 {dimension_numbers = #tpu.dot_dimension_numbers<[1], [0], [0], [1], [0, 0, 1, 1], [], []>} : vector<16x16xf32>, vector<16x128xf32>, vector<16x128xf32> -> vector<16x128xf32>
    %101 = vector.extract_strided_slice %100 {offsets = [0, 0], sizes = [16, 24], strides = [1, 1]} : vector<16x128xf32> to vector<16x24xf32>
    %c2 = arith.constant 2 : index
    %c0_46 = arith.constant 0 : index
    %c0_47 = arith.constant 0 : index
    %102 = vector.load %arg6[%c2, %c0_46, %c0_47] : memref<3x16x24xf32, #tpu.memory_space<vmem>>, vector<1x16x24xf32>
    %103 = vector.shape_cast %102 : vector<1x16x24xf32> to vector<16x24xf32>
    %104 = vector.shape_cast %101 : vector<16x24xf32> to vector<1x16x24xf32>
    tpu.vector_store %arg6[%c2, %c0_46, %c0_47], %104 {strides = array<i32>} : memref<3x16x24xf32, #tpu.memory_space<vmem>>, vector<1x16x24xf32>,
    return
  }
}

</mosaic_0001>

<bundles_post_ra>
// kernel: tpu_custom_call.1
= control target key start
LH: loop header
LB: loop body
LE: loop exit
PB: predicated region body
PF: predicated region fallthrough
CT: control target
= control target key end

     0   :  { %11 = vsyncpa [#allocation3], 0  ;;  %s1746_s0 = inlined_call_operand.hbm [shape: f32[16,32], index: 0, kind: input, shape index: {}]   ;;  %s1747_s1 = inlined_call_operand.vmem [shape: f32[128,128], index: 1, kind: input, shape index: {}]   ;;  %s1748_s2 = inlined_call_operand.hbm [shape: f32[544,128], index: 2, kind: input, shape index: {}]   ;;  %s1749_s3 = inlined_call_operand.hbm [shape: f32[640,128], index: 3, kind: input, shape index: {}]   ;;  %s1750_s4 = inlined_call_operand.vmem [shape: f32[8,128], index: 4, kind: input, shape index: {}]   ;;  %s1751_s5 = inlined_call_operand.vmem [shape: f32[128,8], index: 5, kind: input, shape index: {}]   ;;  %s1752_s6 = inlined_call_operand.hbm [shape: f32[3,16,24], index: 6, kind: output, shape index: {}]  }
   0x1   :  { %12 = vsyncpa [#allocation6], 0 }
   0x2   :  { %13 = vsyncpa [#allocation4], 0  ;;  %s33_s23 = sshll.u32 %s1748_s2, 4  ;;  %s1377_s24 = smov [#allocation5]   ;;  %s34_s23 = int_to_ptr.hbm [resolvable:$true] %s33_s23 }
   0x3   :  { %s35_s25 = sshll.u32 %s1377_s24, 4  ;;  %s18_s28 = sshll.u32 %s1746_s0, 4  ;;  %s36_s25 = int_to_ptr.vmem [resolvable:$true] %s35_s25  ;;  %s19_s28 = int_to_ptr.hbm [resolvable:$true] %s18_s28 }
   0x4   :  { %s1378_s29 = smov 128   ;;  %s1379_s30 = smov 8  }
   0x5   :  { %41 = dma.hbm_to_vmem [thread:$0]  %s34_s23, 8704, %s36_s25, [#allocation6], %s1378_s29, %s1378_s29, %s1379_s30  }
   0x6   :  { %s1380_s7 = smov [#allocation2]   ;;  %s46_s2 = sshll.u32 %s1749_s3, 4  ;;  %s47_s2 = int_to_ptr.hbm [resolvable:$true] %s46_s2 }
   0x7   :  { %s20_s8 = sshll.u32 %s1380_s7, 4  ;;  %s1381_s0 = smov [#allocation7]   ;;  %s21_s8 = int_to_ptr.vmem [resolvable:$true] %s20_s8 }
   0x8   :  { %26 = dma.hbm_to_vmem [thread:$0]  %s19_s28, 256, %s21_s8, [#allocation3], %s1378_s29, %s1378_s29, %s1379_s30  }
   0x9   :  { %s48_s11 = sshll.u32 %s1381_s0, 4  ;;  %s49_s11 = int_to_ptr.vmem [resolvable:$true] %s48_s11 }
   0xa   :  { %54 = dma.hbm_to_vmem [thread:$0]  %s47_s2, 10240, %s49_s11, [#allocation6], %s1378_s29, %s1378_s29, %s1379_s30  }
   0xb   :  { %1371 = dma.done.wait [#allocation3], 256  }
   0xc   :  { %1372 = vsyncadd [#allocation3], 4294967040 }
   0xd   :  { %1373 = dma.done.wait [#allocation6], 18944  }
   0xe   :  { %1374 = vsyncadd [#allocation6], 4294948352  ;;  %v109_v0 = vld [vmem:[#allocation5 + $0x18] sm:$0xff]  ;;  %v108_v1 = vld [vmem:[#allocation5 + $0x10] sm:$0xff]  ;;  %vm111_vm0 = vcmask 261120   ;;  %v1382_v50 = vmov 0  }
   0xf   :  { %130 = vmatpush.msra.mxu0 %v109_v0  ;;  %v107_v2 = vld [vmem:[#allocation5 + $0x8] sm:$0xff]  ;;  %v158_v3 = vld [vmem:[#allocation5 + $0x98] sm:$0xff]  ;;  %v157_v4 = vld [vmem:[#allocation5 + $0x90] sm:$0xff]  ;;  %1260 = vset.pattern.permute.xlu0 %v1382_v50  ;;  %s1388_s23 = smov 96   ;;  %vm1102_vm1 = vcmask 130048   ;;  %vm1132_vm2 = vcmask 195584  }
  0x10   :  { %160 = vmatpush.msra.mxu2 %v158_v3  ;;  %v106_v5 = vld [vmem:[#allocation5] sm:$0xff]  ;;  %v156_v6 = vld [vmem:[#allocation5 + $0x88] sm:$0xff]  ;;  %v71_v7 = vld [vmem:[#allocation2] sm:$0xff]  ;;  %1261 = vset.pattern.permute.xlu1 %v1382_v50  ;;  %s1209_s27 = sshll.u32 %s1752_s6, 4  ;;  %s1210_s27 = int_to_ptr.hbm [resolvable:$true] %s1209_s27 }
  0x11   :  { %131 = vmatpush.msra.mxu0 %v108_v1  ;;  %v155_v8 = vld [vmem:[#allocation5 + $0x80] sm:$0xff]  ;;  %v154_v9 = vld [vmem:[#allocation5 + $0x78] sm:$0xff]  ;;  %v153_v10 = vld [vmem:[#allocation5 + $0x70] sm:$0xff]  ;;  %1262 = vset.pattern.permute.xlu2 %v1382_v50 }
  0x12   :  { %161 = vmatpush.msra.mxu2 %v157_v4  ;;  %v152_v11 = vld [vmem:[#allocation5 + $0x68] sm:$0xff]  ;;  %v72_v12 = vld [vmem:[#allocation2 + $0x8] sm:$0xff]  ;;  %v151_v13 = vld [vmem:[#allocation5 + $0x60] sm:$0xff] }
  0x13   :  { %132 = vmatpush.msra.mxu0 %v107_v2  ;;  %v150_v14 = vld [vmem:[#allocation5 + $0x58] sm:$0xff]  ;;  %v149_v15 = vld [vmem:[#allocation5 + $0x50] sm:$0xff]  ;;  %v148_v16 = vld [vmem:[#allocation5 + $0x48] sm:$0xff] }
  0x14   :  { %162 = vmatpush.msra.mxu2 %v156_v6  ;;  %v147_v17 = vld [vmem:[#allocation5 + $0x40] sm:$0xff]  ;;  %v146_v18 = vld [vmem:[#allocation5 + $0x38] sm:$0xff]  ;;  %v145_v19 = vld [vmem:[#allocation5 + $0x30] sm:$0xff] }
  0x15   :  { %133 = vmatpush.msra.mxu0 %v106_v5  ;;  %v144_v20 = vld [vmem:[#allocation5 + $0x28] sm:$0xff]  ;;  %v143_v21 = vld [vmem:[#allocation5 + $0x20] sm:$0xff]  ;;  %v200_v22 = vld [vmem:[#allocation5 + $0x118] sm:$0xff] }
  0x16   :  { %1223 = vmatmul.msk.f32.vlgmr.msra.gmra.mxu0 %vm111_vm0, %v71_v7  ;;  %163 = vmatpush.msra.mxu2 %v155_v8  ;;  %v199_v23 = vld [vmem:[#allocation5 + $0x110] sm:$0xff]  ;;  %v198_v24 = vld [vmem:[#allocation5 + $0x108] sm:$0xff]  ;;  %v197_v25 = vld [vmem:[#allocation5 + $0x100] sm:$0xff] }
  0x17   :  { %v196_v26 = vld [vmem:[#allocation5 + $0xf8] sm:$0xff]  ;;  %v195_v27 = vld [vmem:[#allocation5 + $0xf0] sm:$0xff]  ;;  %v194_v28 = vld [vmem:[#allocation5 + $0xe8] sm:$0xff] }
  0x18   :  { %164 = vmatpush.msra.mxu2 %v154_v9  ;;  %v193_v29 = vld [vmem:[#allocation5 + $0xe0] sm:$0xff]  ;;  %v1446_v30 = vld [vmem:[%s1750_s4] sm:$0xff]  ;;  %v192_v31 = vld [vmem:[#allocation5 + $0xd8] sm:$0xff] }
  0x19   :  { %v110_v32 = vperm.slane %v1446_v30, 0  ;;  %v191_v33 = vld [vmem:[#allocation5 + $0xd0] sm:$0xff]  ;;  %v190_v34 = vld [vmem:[#allocation5 + $0xc8] sm:$0xff]  ;;  %v189_v37 = vld [vmem:[#allocation5 + $0xc0] sm:$0xff]  ;;  %v159_v3 = vperm.slane %v1446_v30, 1 }
  0x1a   :  { %165 = vmatpush.msra.mxu2 %v153_v10  ;;  %v188_v39 = vld [vmem:[#allocation5 + $0xb8] sm:$0xff]  ;;  %v187_v43 = vld [vmem:[#allocation5 + $0xb0] sm:$0xff]  ;;  %v186_v44 = vld [vmem:[#allocation5 + $0xa8] sm:$0xff] }
  0x1b   :  { %v185_v45 = vld [vmem:[#allocation5 + $0xa0] sm:$0xff]  ;;  %v1452_v46 = vld [vmem:[%s1747_s1 + $0x78] sm:$0xff]  ;;  %v242_v48 = vld [vmem:[#allocation5 + $0x198] sm:$0xff] }
  0x1c   :  { %166 = vmatpush.msra.mxu2 %v152_v11  ;;  %v1457_v47 = vld [vmem:[%s1747_s1 + $0x70] sm:$0xff]  ;;  %407 = vmatpush.msra.mxu1 %v1452_v46  ;;  %v241_v49 = vld [vmem:[#allocation5 + $0x190] sm:$0xff]  ;;  %v1463_v51 = vld [vmem:[%s1747_s1 + $0x68] sm:$0xff] }
  0x1d   :  { %244 = vmatpush.msra.mxu3 %v242_v48  ;;  %v240_v52 = vld [vmem:[#allocation5 + $0x188] sm:$0xff]  ;;  %v1469_v53 = vld [vmem:[%s1747_s1 + $0x60] sm:$0xff]  ;;  %v239_v54 = vld [vmem:[#allocation5 + $0x180] sm:$0xff] }
  0x1e   :  { %1224 = vmatmul.msk.f32.gmra.mxu0 %vm111_vm0, %v72_v12  ;;  %167 = vmatpush.msra.mxu2 %v151_v13  ;;  %v1475_v55 = vld [vmem:[%s1747_s1 + $0x58] sm:$0xff]  ;;  %v238_v56 = vld [vmem:[#allocation5 + $0x178] sm:$0xff]  ;;  %v1486_v58 = vld [vmem:[%s1747_s1 + $0x50] sm:$0xff] }
  0x1f   :  { %408 = vmatpush.msra.mxu1 %v1457_v47  ;;  %245 = vmatpush.msra.mxu3 %v241_v49  ;;  %v1481_v57 = vld [vmem:[%s1751_s5 + $0x78] sm:$0xff]  ;;  %v237_v59 = vld [vmem:[#allocation5 + $0x170] sm:$0xff]  ;;  %v1493_v60 = vld [vmem:[%s1747_s1 + $0x48] sm:$0xff] }
  0x20   :  { %168 = vmatpush.msra.mxu2 %v150_v14  ;;  %404 = vperm.xlu0 %1260, %v1481_v57   ;;  %v236_v61 = vld [vmem:[#allocation5 + $0x168] sm:$0xff]  ;;  %v81_v62 = vld [vmem:[%s1747_s1 + $0x40] sm:$0xff]  ;;  %v235_v63 = vld [vmem:[#allocation5 + $0x160] sm:$0xff] }
  0x21   :  { %409 = vmatpush.msra.mxu1 %v1463_v51  ;;  %246 = vmatpush.msra.mxu3 %v240_v52  ;;  %v1503_v0 = vld [vmem:[%s1751_s5 + $0x70] sm:$0xff]  ;;  %v80_v1 = vld [vmem:[%s1747_s1 + $0x38] sm:$0xff]  ;;  %v234_v2 = vld [vmem:[#allocation5 + $0x158] sm:$0xff] }
  0x22   :  { %169 = vmatpush.msra.mxu2 %v149_v15  ;;  %v79_v4 = vld [vmem:[%s1747_s1 + $0x30] sm:$0xff]  ;;  %v233_v5 = vld [vmem:[#allocation5 + $0x150] sm:$0xff]  ;;  %v78_v6 = vld [vmem:[%s1747_s1 + $0x28] sm:$0xff] }
  0x23   :  { %410 = vmatpush.msra.mxu1 %v1469_v53  ;;  %247 = vmatpush.msra.mxu3 %v239_v54  ;;  %v232_v8 = vld [vmem:[#allocation5 + $0x148] sm:$0xff]  ;;  %v77_v10 = vld [vmem:[%s1747_s1 + $0x20] sm:$0xff]  ;;  %v231_v11 = vld [vmem:[#allocation5 + $0x140] sm:$0xff] }
  0x24   :  { %170 = vmatpush.msra.mxu2 %v148_v16  ;;  %v76_v13 = vld [vmem:[%s1747_s1 + $0x18] sm:$0xff]  ;;  %v1525_v14 = vld [vmem:[%s1751_s5 + $0x48] sm:$0xff]  ;;  %v75_v16 = vld [vmem:[%s1747_s1 + $0x10] sm:$0xff] }
  0x25   :  { %411 = vmatpush.msra.mxu1 %v1475_v55  ;;  %248 = vmatpush.msra.mxu3 %v238_v56  ;;  %v230_v15 = vld [vmem:[#allocation5 + $0x138] sm:$0xff]  ;;  %v1614_v48 = vld [vmem:[%s1751_s5 + $0x20] sm:$0xff]  ;;  %v319_v54 = vld [vmem:[#allocation7 + $0x40] sm:$0xff] }
  0x26   :  { %171 = vmatpush.msra.mxu2 %v147_v17  ;;  %v229_v17 = vld [vmem:[#allocation5 + $0x130] sm:$0xff]  ;;  %v318_v49 = vld [vmem:[#allocation7 + $0x38] sm:$0xff]  ;;  %v320_v56 = vld [vmem:[#allocation7 + $0x48] sm:$0xff] }
  0x27   :  { %412 = vmatpush.msra.mxu1 %v1486_v58  ;;  %249 = vmatpush.msra.mxu3 %v237_v59  ;;  %v323_v59 = vld [vmem:[#allocation7 + $0x60] sm:$0xff] }
  0x28   :  { %172 = vmatpush.msra.mxu2 %v146_v18  ;;  %399 = vperm.xlu0 %1260, %v1503_v0   ;;  %v74_v18 = vld [vmem:[%s1747_s1 + $0x8] sm:$0xff] }
  0x29   :  { %413 = vmatpush.msra.mxu1 %v1493_v60  ;;  %250 = vmatpush.msra.mxu3 %v236_v61  ;;  %v283_v61 = vld [vmem:[#allocation5 + $0x210] sm:$0xff] }
  0x2a   :  { %173 = vmatpush.msra.mxu2 %v145_v19 }
  0x2b   :  { %414 = vmatpush.msra.mxu1 %v81_v62  ;;  %251 = vmatpush.msra.mxu3 %v235_v63  ;;  %v324_v63 = vld [vmem:[#allocation7 + $0x68] sm:$0xff] }
  0x2c   :  { %174 = vmatpush.msra.mxu2 %v144_v20  ;;  %v228_v20 = vld [vmem:[#allocation5 + $0x128] sm:$0xff] }
  0x2d   :  { %415 = vmatpush.msra.mxu1 %v80_v1  ;;  %252 = vmatpush.msra.mxu3 %v234_v2  ;;  %v281_v2 = vld [vmem:[#allocation5 + $0x200] sm:$0xff] }
  0x2e   :  { %175 = vmatpush.msra.mxu2 %v143_v21 }
  0x2f   :  { %416 = vmatpush.msra.mxu1 %v79_v4  ;;  %253 = vmatpush.msra.mxu3 %v233_v5  ;;  %v279_v5 = vld [vmem:[#allocation5 + $0x1f0] sm:$0xff] }
  0x30   :  { %202 = vmatpush.msrb.mxu2 %v200_v22  ;;  %374 = vperm.xlu0 %1260, %v1525_v14   ;;  %v73_v22 = vld [vmem:[%s1747_s1] sm:$0xff]  ;;  %s1389_s1 = smov [#allocation8]  }
  0x31   :  { %417 = vmatpush.msra.mxu1 %v78_v6  ;;  %254 = vmatpush.msra.mxu3 %v232_v8  ;;  %v326_v8 = vld [vmem:[#allocation7 + $0x78] sm:$0xff]  ;;  %s1207_s24 = sshll.u32 %s1389_s1, 4  ;;  %s1208_s24 = int_to_ptr.vmem [resolvable:$true] %s1207_s24 }
  0x32   :  { %203 = vmatpush.msrb.mxu2 %v199_v23  ;;  %v311_v23 = vld [vmem:[#allocation7] sm:$0xff] }
  0x33   :  { %418 = vmatpush.msra.mxu1 %v77_v10  ;;  %255 = vmatpush.msra.mxu3 %v231_v11  ;;  %v274_v11 = vld [vmem:[#allocation5 + $0x1c8] sm:$0xff] }
  0x34   :  { %204 = vmatpush.msrb.mxu2 %v198_v24 }
  0x35   :  { %419 = vmatpush.msra.mxu1 %v76_v13  ;;  %256 = vmatpush.msra.mxu3 %v230_v15  ;;  %v271_v15 = vld [vmem:[#allocation5 + $0x1b0] sm:$0xff] }
  0x36   :  { %205 = vmatpush.msrb.mxu2 %v197_v25  ;;  %v227_v25 = vld [vmem:[#allocation5 + $0x120] sm:$0xff] }
  0x37   :  { %420 = vmatpush.msra.mxu1 %v75_v16  ;;  %257 = vmatpush.msra.mxu3 %v229_v17  ;;  %v269_v17 = vld [vmem:[#allocation5 + $0x1a0] sm:$0xff] }
  0x38   :  { %206 = vmatpush.msrb.mxu2 %v196_v26  ;;  %v312_v26 = vld [vmem:[#allocation7 + $0x8] sm:$0xff] }
  0x39   :  { %421 = vmatpush.msra.mxu1 %v74_v18  ;;  %258 = vmatpush.msra.mxu3 %v228_v20 }
  0x3a   :  { %207 = vmatpush.msrb.mxu2 %v195_v27  ;;  %v313_v27 = vld [vmem:[#allocation7 + $0x10] sm:$0xff] }
  0x3b   :  { %422 = vmatpush.msra.mxu1 %v73_v22  ;;  %259 = vmatpush.msra.mxu3 %v227_v25 }
  0x3c   :  { %208 = vmatpush.msrb.mxu2 %v194_v28  ;;  %423 = vmatmul.f32.vlgmr.msra.gmra.mxu1 %v311_v23  ;;  %v1547_v28 = vld [vmem:[%s1751_s5 + $0x68] sm:$0xff] }
  0x3d   :  { %1231 = vmatpush.msrb.mxu3 %v1452_v46  ;;  %394 = vperm.xlu1 %1261, %v1547_v28  }
  0x3e   :  { %209 = vmatpush.msrb.mxu2 %v193_v29  ;;  %v1552_v29 = vld [vmem:[%s1751_s5 + $0x30] sm:$0xff] }
  0x3f   :  { %1232 = vmatpush.msrb.mxu3 %v1457_v47  ;;  %359 = vperm.xlu0 %1260, %v1552_v29  }
  0x40   :  { %210 = vmatpush.msrb.mxu2 %v192_v31  ;;  %v314_v31 = vld [vmem:[#allocation7 + $0x18] sm:$0xff] }
  0x41   :  { %1233 = vmatpush.msrb.mxu3 %v1463_v51 }
  0x42   :  { %211 = vmatpush.msrb.mxu2 %v191_v33  ;;  %v1564_v33 = vld [vmem:[%s1751_s5 + $0x18] sm:$0xff] }
  0x43   :  { %1234 = vmatpush.msrb.mxu3 %v1469_v53  ;;  %v1620_v53 = vld [vmem:[%s1751_s5 + $0x8] sm:$0xff] }
  0x44   :  { %212 = vmatpush.msrb.mxu2 %v190_v34  ;;  %426 = vmatmul.f32.gmra.mxu1 %v312_v26  ;;  %v1571_v34 = vld [vmem:[%s1751_s5 + $0x58] sm:$0xff] }
  0x45   :  { %1235 = vmatpush.msrb.mxu3 %v1475_v55  ;;  %384 = vperm.xlu2 %1262, %v1571_v34   ;;  %v321_v55 = vld [vmem:[#allocation7 + $0x50] sm:$0xff] }
  0x46   :  { %213 = vmatpush.msrb.mxu2 %v189_v37  ;;  %v1582_v37 = vld [vmem:[%s1751_s5] sm:$0xff] }
  0x47   :  { %1236 = vmatpush.msrb.mxu3 %v1486_v58  ;;  %344 = vperm.xlu0 %1260, %v1564_v33   ;;  %v322_v58 = vld [vmem:[#allocation7 + $0x58] sm:$0xff] }
  0x48   :  { %214 = vmatpush.msrb.mxu2 %v188_v39  ;;  %v316_v39 = vld [vmem:[#allocation7 + $0x28] sm:$0xff] }
  0x49   :  { %1237 = vmatpush.msrb.mxu3 %v1493_v60  ;;  %v284_v60 = vld [vmem:[#allocation5 + $0x218] sm:$0xff] }
  0x4a   :  { %215 = vmatpush.msrb.mxu2 %v187_v43  ;;  %v317_v43 = vld [vmem:[#allocation7 + $0x30] sm:$0xff]  ;;  %286 = vmatpush.msrb.mxu0 %v284_v60 }
  0x4b   :  { %1238 = vmatpush.msrb.mxu3 %v81_v62  ;;  %v1383_v62 = vmov 1  }
  0x4c   :  { %216 = vmatpush.msrb.mxu2 %v186_v44  ;;  %429 = vmatmul.f32.gmra.mxu1 %v313_v27  ;;  %v1608_v44 = vld [vmem:[%s1751_s5 + $0x10] sm:$0xff] }
  0x4d   :  { %1239 = vmatpush.msrb.mxu3 %v80_v1  ;;  %v282_v1 = vld [vmem:[#allocation5 + $0x208] sm:$0xff]  ;;  %287 = vmatpush.msrb.mxu0 %v283_v61 }
  0x4e   :  { %217 = vmatpush.msrb.mxu2 %v185_v45 }
  0x4f   :  { %1240 = vmatpush.msrb.mxu3 %v79_v4  ;;  %329 = vperm.xlu0 %1260, %v1582_v37   ;;  %v280_v4 = vld [vmem:[#allocation5 + $0x1f8] sm:$0xff] }
  0x50   :  { %288 = vmatpush.msrb.mxu0 %v282_v1 }
  0x51   :  { %1241 = vmatpush.msrb.mxu3 %v78_v6  ;;  %v278_v6 = vld [vmem:[#allocation5 + $0x1e8] sm:$0xff] }
  0x52   :  { %289 = vmatpush.msrb.mxu0 %v281_v2 }
  0x53   :  { %1242 = vmatpush.msrb.mxu3 %v77_v10  ;;  %v275_v10 = vld [vmem:[#allocation5 + $0x1d0] sm:$0xff] }
  0x54   :  { %432 = vmatmul.f32.gmra.mxu1 %v314_v31  ;;  %290 = vmatpush.msrb.mxu0 %v280_v4 }
  0x55   :  { %1243 = vmatpush.msrb.mxu3 %v76_v13  ;;  %v272_v13 = vld [vmem:[#allocation5 + $0x1b8] sm:$0xff] }
  0x56   :  { %291 = vmatpush.msrb.mxu0 %v279_v5 }
  0x57   :  { %1244 = vmatpush.msrb.mxu3 %v75_v16  ;;  %1265 = vset.pattern.permute.xlu0 %v1383_v62  ;;  %v270_v16 = vld [vmem:[#allocation5 + $0x1a8] sm:$0xff] }
  0x58   :  { %557 = vperm.xlu0 %1265, %v1547_v28   ;;  %292 = vmatpush.msrb.mxu0 %v278_v6 }
  0x59   :  { %1245 = vmatpush.msrb.mxu3 %v74_v18 }
  0x5b   :  { %1246 = vmatpush.msrb.mxu3 %v73_v22  ;;  %v243_v22 = vperm.slane %v1446_v30, 3 }
  0x93   :  { %v135_v35 = vpop.f32.mrf.mxu0 }
  0x94   :  { %v136_v36 = vadd.f32 %v135_v35, %v110_v32  ;;  %v315_v35 = vld [vmem:[#allocation7 + $0x20] sm:$0xff] }
  0x95   :  { %435 = vmatmul.f32.gmra.mxu1 %v315_v35 }
  0x96   :  { %v141_v38 = vmax.f32 %v136_v36, 0.0  ;;  %v1577_v36 = vld [vmem:[%s1751_s5 + $0x40] sm:$0xff] }
  0x97   :  { %537 = vperm.xlu0 %1265, %v1577_v36  }
  0x98   :  { %176 = vmatmul.f32.vlgmr.msra.gmra.mxu2 %v141_v38  ;;  %v1589_v38 = vld [vmem:[%s1751_s5 + $0x50] sm:$0xff] }
  0x99   :  { %379 = vperm.xlu2 %1262, %v1589_v38  }
  0x9b   :  { %v138_v40 = vpop.f32.mrf.mxu0 }
  0x9c   :  { %v139_v41 = vadd.f32 %v138_v40, %v110_v32  ;;  %v1559_v32 = vld [vmem:[%s1751_s5 + $0x60] sm:$0xff]  ;;  %v1595_v40 = vld [vmem:[%s1751_s5 + $0x28] sm:$0xff] }
  0x9d   :  { %389 = vperm.xlu1 %1261, %v1559_v32   ;;  %438 = vmatmul.f32.gmra.mxu1 %v316_v39 }
  0x9e   :  { %v142_v42 = vmax.f32 %v139_v41, 0.0  ;;  %v201_v41 = vperm.slane %v1446_v30, 2 }
  0x9f   :  { %525 = vperm.xlu0 %1265, %v1595_v40  }
  0xa0   :  { %179 = vmatmul.f32.gmra.mxu2 %v142_v42  ;;  %v1602_v42 = vld [vmem:[%s1751_s5 + $0x38] sm:$0xff]  ;;  %s1387_s5 = smov 112  }
  0xa1   :  { %364 = vperm.xlu2 %1262, %v1602_v42  }
  0xa5   :  { %369 = vperm.xlu1 %1261, %v1577_v36   ;;  %441 = vmatmul.f32.gmra.mxu1 %v317_v43 }
  0xa7   :  { %513 = vperm.xlu0 %1265, %v1608_v44  }
  0xa9   :  { %349 = vperm.xlu2 %1262, %v1614_v48  }
  0xad   :  { %354 = vperm.xlu1 %1261, %v1595_v40   ;;  %444 = vmatmul.f32.gmra.mxu1 %v318_v49 }
  0xb1   :  { %334 = vperm.xlu2 %1262, %v1620_v53  }
  0xb5   :  { %339 = vperm.xlu1 %1261, %v1608_v44   ;;  %447 = vmatmul.f32.gmra.mxu1 %v319_v54 }
  0xb9   :  { %1264 = vset.pattern.permute.xlu2 %v1383_v62  ;;  %v1639_v18 = vpop.f32.mrf.mxu1 }
  0xba   :  { %561 = vperm.xlu2 %1264, %v1503_v0  }
  0xbd   :  { %450 = vmatmul.f32.gmra.mxu1 %v320_v56  ;;  %1263 = vset.pattern.permute.xlu1 %v1383_v62  ;;  %v1385_v56 = vmov 3  }
  0xbe   :  { %565 = vperm.xlu1 %1263, %v1481_v57  }
  0xc2   :  { %549 = vperm.xlu2 %1264, %v1571_v34  }
  0xc6   :  { %553 = vperm.xlu1 %1263, %v1559_v32  }
  0xca   :  { %541 = vperm.xlu2 %1264, %v1525_v14  }
  0xce   :  { %545 = vperm.xlu1 %1263, %v1589_v38  }
  0xd2   :  { %529 = vperm.xlu2 %1264, %v1552_v29  }
  0xd6   :  { %533 = vperm.xlu1 %1263, %v1602_v42  }
  0xda   :  { %517 = vperm.xlu2 %1264, %v1564_v33  }
  0xde   :  { %521 = vperm.xlu1 %1263, %v1614_v48  }
  0xe2   :  { %505 = vperm.xlu2 %1264, %v1582_v37  }
  0xe6   :  { %509 = vperm.xlu1 %1263, %v1620_v53  }
 0x11b   :  { %v177_v7 = vpop.f32.mrf.mxu2 }
 0x11c   :  { %v178_v9 = vadd.f32 %v177_v7, %v159_v3  ;;  %v277_v7 = vld [vmem:[#allocation5 + $0x1e0] sm:$0xff] }
 0x11d   :  { %293 = vmatpush.msrb.mxu0 %v277_v7 }
 0x11e   :  { %v183_v12 = vmax.f32 %v178_v9, 0.0  ;;  %v276_v9 = vld [vmem:[#allocation5 + $0x1d8] sm:$0xff] }
 0x11f   :  { %294 = vmatpush.msrb.mxu0 %v276_v9 }
 0x120   :  { %218 = vmatmul.f32.vlgmr.msrb.gmra.mxu2 %v183_v12  ;;  %v273_v12 = vld [vmem:[#allocation5 + $0x1c0] sm:$0xff] }
 0x121   :  { %295 = vmatpush.msrb.mxu0 %v275_v10 }
 0x123   :  { %v180_v19 = vpop.f32.mrf.mxu2  ;;  %296 = vmatpush.msrb.mxu0 %v274_v11 }
 0x124   :  { %v181_v21 = vadd.f32 %v180_v19, %v159_v3  ;;  %v325_v3 = vld [vmem:[#allocation7 + $0x70] sm:$0xff]  ;;  %v1641_v19 = vpop.f32.mrf.mxu1 }
 0x125   :  { %297 = vmatpush.msrb.mxu0 %v273_v12 }
 0x126   :  { %v184_v24 = vmax.f32 %v181_v21, 0.0  ;;  %v1384_v21 = vmov 2  }
 0x127   :  { %298 = vmatpush.msrb.mxu0 %v272_v13  ;;  %1267 = vset.pattern.permute.xlu1 %v1384_v21 }
 0x128   :  { %221 = vmatmul.f32.gmra.mxu2 %v184_v24  ;;  %1266 = vset.pattern.permute.xlu0 %v1384_v21 }
 0x129   :  { %299 = vmatpush.msrb.mxu0 %v271_v15  ;;  %722 = vperm.xlu1 %1267, %v1503_v0  }
 0x12a   :  { %726 = vperm.xlu0 %1266, %v1481_v57   ;;  %1268 = vset.pattern.permute.xlu2 %v1384_v21 }
 0x12b   :  { %300 = vmatpush.msrb.mxu0 %v270_v16  ;;  %718 = vperm.xlu2 %1268, %v1547_v28  }
 0x12c   :  { %v1643_v20 = vpop.f32.mrf.mxu1 }
 0x12d   :  { %301 = vmatpush.msrb.mxu0 %v269_v17 }
 0x131   :  { %714 = vperm.xlu1 %1267, %v1559_v32  }
 0x132   :  { %706 = vperm.xlu0 %1266, %v1589_v38  }
 0x133   :  { %710 = vperm.xlu2 %1268, %v1571_v34  }
 0x134   :  { %v1649_v26 = vpop.f32.mrf.mxu1 }
 0x139   :  { %702 = vperm.xlu1 %1267, %v1525_v14  }
 0x13a   :  { %694 = vperm.xlu0 %1266, %v1602_v42  }
 0x13b   :  { %698 = vperm.xlu2 %1268, %v1577_v36  }
 0x13c   :  { %v1655_v39 = vpop.f32.mrf.mxu1 }
 0x141   :  { %690 = vperm.xlu1 %1267, %v1552_v29  }
 0x142   :  { %682 = vperm.xlu0 %1266, %v1614_v48  }
 0x143   :  { %686 = vperm.xlu2 %1268, %v1595_v40  }
 0x144   :  { %v1662_v43 = vpop.f32.mrf.mxu1 }
 0x149   :  { %678 = vperm.xlu1 %1267, %v1564_v33  }
 0x14a   :  { %670 = vperm.xlu0 %1266, %v1620_v53  }
 0x14b   :  { %674 = vperm.xlu2 %1268, %v1608_v44  }
 0x14c   :  { %v442_v49 = vpop.f32.mrf.mxu1 }
 0x151   :  { %666 = vperm.xlu1 %1267, %v1582_v37  }
 0x152   :  { %1270 = vset.pattern.permute.xlu0 %v1385_v56 }
 0x153   :  { %1269 = vset.pattern.permute.xlu2 %v1385_v56  ;;  %883 = vperm.xlu0 %1270, %v1503_v0  }
 0x154   :  { %887 = vperm.xlu2 %1269, %v1481_v57  }
 0x159   :  { %1271 = vset.pattern.permute.xlu1 %v1385_v56 }
 0x15a   :  { %879 = vperm.xlu1 %1271, %v1547_v28  }
 0x15b   :  { %863 = vperm.xlu0 %1270, %v1525_v14  }
 0x15c   :  { %875 = vperm.xlu2 %1269, %v1559_v32  }
 0x162   :  { %871 = vperm.xlu1 %1271, %v1571_v34  }
 0x163   :  { %851 = vperm.xlu0 %1270, %v1552_v29  }
 0x164   :  { %867 = vperm.xlu2 %1269, %v1589_v38  }
 0x16a   :  { %859 = vperm.xlu1 %1271, %v1577_v36  }
 0x16b   :  { %839 = vperm.xlu0 %1270, %v1564_v33  }
 0x16c   :  { %855 = vperm.xlu2 %1269, %v1602_v42  }
 0x172   :  { %847 = vperm.xlu1 %1271, %v1595_v40  }
 0x173   :  { %827 = vperm.xlu0 %1270, %v1582_v37  }
 0x174   :  { %843 = vperm.xlu2 %1269, %v1614_v48  }
 0x17a   :  { %835 = vperm.xlu1 %1271, %v1608_v44  }
 0x17c   :  { %831 = vperm.xlu2 %1269, %v1620_v53  }
 0x1a3   :  { %v219_v45 = vpop.f32.mrf.mxu2 }
 0x1a4   :  { %v220_v46 = vadd.f32 %v219_v45, %v201_v41 }
 0x1a6   :  { %v225_v47 = vmax.f32 %v220_v46, 0.0  ;;  %v405_v46 = vpop.permute.xlu0 %404 }
 0x1a8   :  { %260 = vmatmul.f32.vlgmr.msra.gmra.mxu3 %v225_v47 }
 0x1ab   :  { %v222_v50 = vpop.f32.mrf.mxu2 }
 0x1ac   :  { %v223_v51 = vadd.f32 %v222_v50, %v201_v41  ;;  %v395_v50 = vpop.permute.xlu1 %394 }
 0x1ae   :  { %v226_v52 = vmax.f32 %v223_v51, 0.0  ;;  %v385_v51 = vpop.permute.xlu2 %384  ;;  %v400_v54 = vpop.permute.xlu0 %399 }
 0x1b0   :  { %263 = vmatmul.f32.gmra.mxu3 %v226_v52 }
 0x1b6   :  { %v380_v60 = vpop.permute.xlu2 %379  ;;  %v375_v61 = vpop.permute.xlu0 %374 }
 0x1b8   :  { %453 = vmatmul.f32.vlgmr.msrb.gmra.mxu3 %v321_v55  ;;  %v445_v55 = vpop.f32.mrf.mxu1 }
 0x1be   :  { %v365_v28 = vpop.permute.xlu2 %364  ;;  %v360_v6 = vpop.permute.xlu0 %359 }
 0x1bf   :  { %v446_v36 = vadd.f32 %v445_v55, %v365_v28  ;;  %v443_v16 = vadd.f32 %v442_v49, %v360_v6  ;;  %v1386_v49 = vmov 4  }
 0x1c0   :  { %456 = vmatmul.f32.gmra.mxu3 %v322_v58  ;;  %v390_v58 = vpop.permute.xlu1 %389  ;;  %v448_v62 = vpop.f32.mrf.mxu1  ;;  %1274 = vset.pattern.permute.xlu0 %v1386_v49 }
 0x1c1   :  { %1272 = vset.pattern.permute.xlu1 %v1386_v49  ;;  %1273 = vset.pattern.permute.xlu2 %v1386_v49 }
 0x1c2   :  { %1000 = vperm.xlu1 %1272, %v1564_v33   ;;  %996 = vperm.xlu2 %1273, %v1608_v44   ;;  %v491_v33 = vld [vmem:[#allocation7 + $0x98] sm:$0xff] }
 0x1c6   :  { %v350_v29 = vpop.permute.xlu2 %349  ;;  %v345_v15 = vpop.permute.xlu0 %344 }
 0x1c7   :  { %v434_v42 = vadd.f32 %v1649_v26, %v345_v15 }
 0x1c8   :  { %459 = vmatmul.f32.gmra.mxu3 %v323_v59  ;;  %v451_v32 = vpop.f32.mrf.mxu1 }
 0x1c9   :  { %v452_v10 = vadd.f32 %v451_v32, %v375_v61  ;;  %v499_v61 = vld [vmem:[#allocation7 + $0xd8] sm:$0xff] }
 0x1ca   :  { %992 = vperm.xlu1 %1272, %v1620_v53   ;;  %988 = vperm.xlu2 %1273, %v1582_v37   ;;  %v494_v37 = vld [vmem:[#allocation7 + $0xb0] sm:$0xff] }
 0x1cb   :  { %v481_v38 = vmax.f32 %v452_v10, 0.0 }
 0x1d0   :  { %462 = vmatmul.f32.gmra.mxu3 %v324_v63 }
 0x1d2   :  { %1008 = vperm.xlu1 %1272, %v1595_v40   ;;  %1004 = vperm.xlu2 %1273, %v1614_v48  }
 0x1d8   :  { %465 = vmatmul.f32.gmra.mxu3 %v325_v3  ;;  %v370_v3 = vpop.permute.xlu1 %369 }
 0x1d9   :  { %v449_v13 = vadd.f32 %v448_v62, %v370_v3  ;;  %v500_v62 = vld [vmem:[#allocation7 + $0xe0] sm:$0xff] }
 0x1db   :  { %v480_v17 = vmax.f32 %v449_v13, 0.0 }
 0x1e0   :  { %468 = vmatmul.f32.gmra.mxu3 %v326_v8  ;;  %v355_v11 = vpop.permute.xlu1 %354 }
 0x1e1   :  { %v440_v21 = vadd.f32 %v1662_v43, %v355_v11  ;;  %v330_v43 = vpop.permute.xlu0 %329 }
 0x22b   :  { %v261_v23 = vpop.f32.mrf.mxu3 }
 0x22c   :  { %v262_v24 = vadd.f32 %v261_v23, %v243_v22  ;;  %v437_v23 = vadd.f32 %v1655_v39, %v350_v29  ;;  %v475_v39 = vmax.f32 %v434_v42, 0.0 }
 0x22e   :  { %v267_v25 = vmax.f32 %v262_v24, 0.0  ;;  %v478_v24 = vmax.f32 %v443_v16, 0.0 }
 0x230   :  { %302 = vmatmul.f32.vlgmr.msrb.gmra.mxu0 %v267_v25  ;;  %v340_v25 = vpop.permute.xlu1 %339 }
 0x233   :  { %v264_v27 = vpop.f32.mrf.mxu3 }
 0x234   :  { %v265_v31 = vadd.f32 %v264_v27, %v243_v22  ;;  %v479_v22 = vmax.f32 %v446_v36, 0.0  ;;  %v477_v27 = vmax.f32 %v440_v21, 0.0 }
 0x236   :  { %v268_v35 = vmax.f32 %v265_v31, 0.0  ;;  %v335_v31 = vpop.permute.xlu2 %334 }
 0x238   :  { %305 = vmatmul.f32.gmra.mxu0 %v268_v35  ;;  %v476_v35 = vmax.f32 %v437_v23, 0.0 }
 0x23b   :  { %v454_v41 = vpop.f32.mrf.mxu3 }
 0x23c   :  { %v455_v7 = vadd.f32 %v454_v41, %v380_v60  ;;  %v431_v41 = vadd.f32 %v1643_v20, %v340_v25  ;;  %v498_v60 = vld [vmem:[#allocation7 + $0xd0] sm:$0xff] }
 0x23e   :  { %v482_v12 = vmax.f32 %v455_v7, 0.0  ;;  %v562_v10 = vpop.permute.xlu2 %561 }
 0x243   :  { %v457_v45 = vpop.f32.mrf.mxu3 }
 0x244   :  { %v458_v14 = vadd.f32 %v457_v45, %v385_v51  ;;  %v428_v45 = vadd.f32 %v1641_v19, %v335_v31  ;;  %v490_v19 = vld [vmem:[#allocation7 + $0x90] sm:$0xff]  ;;  %v492_v51 = vld [vmem:[#allocation7 + $0xa0] sm:$0xff] }
 0x246   :  { %v483_v9 = vmax.f32 %v458_v14, 0.0  ;;  %v473_v26 = vmax.f32 %v428_v45, 0.0  ;;  %v550_v29 = vpop.permute.xlu2 %549 }
 0x24b   :  { %v460_v47 = vpop.f32.mrf.mxu3 }
 0x24c   :  { %v461_v5 = vadd.f32 %v460_v47, %v390_v58  ;;  %v474_v47 = vmax.f32 %v431_v41, 0.0  ;;  %v496_v58 = vld [vmem:[#allocation7 + $0xc0] sm:$0xff] }
 0x24e   :  { %v484_v8 = vmax.f32 %v461_v5, 0.0  ;;  %v542_v16 = vpop.permute.xlu2 %541 }
 0x253   :  { %v463_v52 = vpop.f32.mrf.mxu3 }
 0x254   :  { %v464_v0 = vadd.f32 %v463_v52, %v395_v50  ;;  %v488_v50 = vld [vmem:[#allocation7 + $0x80] sm:$0xff]  ;;  %v285_v52 = vperm.slane %v1446_v30, 4  ;;  %v495_v30 = vld [vmem:[#allocation7 + $0xb8] sm:$0xff] }
 0x256   :  { %v485_v34 = vmax.f32 %v464_v0, 0.0 }
 0x25b   :  { %v466_v59 = vpop.f32.mrf.mxu3 }
 0x25c   :  { %v467_v1 = vadd.f32 %v466_v59, %v400_v54  ;;  %v493_v54 = vld [vmem:[#allocation7 + $0xa8] sm:$0xff] }
 0x25d   :  { %v497_v59 = vld [vmem:[#allocation7 + $0xc8] sm:$0xff] }
 0x25e   :  { %v486_v57 = vmax.f32 %v467_v1, 0.0  ;;  %v502_v1 = vld [vmem:[#allocation7 + $0xf0] sm:$0xff] }
 0x263   :  { %v469_v63 = vpop.f32.mrf.mxu3 }
 0x264   :  { %v470_v2 = vadd.f32 %v469_v63, %v405_v46  ;;  %v425_v46 = vadd.f32 %v1639_v18, %v330_v43  ;;  %v489_v18 = vld [vmem:[#allocation7 + $0x88] sm:$0xff] }
 0x265   :  { %v501_v63 = vld [vmem:[#allocation7 + $0xe8] sm:$0xff] }
 0x266   :  { %v487_v4 = vmax.f32 %v470_v2, 0.0  ;;  %v472_v20 = vmax.f32 %v425_v46, 0.0  ;;  %v503_v2 = vld [vmem:[#allocation7 + $0xf8] sm:$0xff] }
 0x268   :  { %568 = vmatpush.msra.mxu2 %v487_v4 }
 0x26a   :  { %569 = vmatpush.msra.mxu2 %v486_v57 }
 0x26c   :  { %570 = vmatpush.msra.mxu2 %v485_v34 }
 0x26e   :  { %571 = vmatpush.msra.mxu2 %v484_v8 }
 0x270   :  { %572 = vmatpush.msra.mxu2 %v483_v9  ;;  %v566_v9 = vpop.permute.xlu1 %565 }
 0x272   :  { %573 = vmatpush.msra.mxu2 %v482_v12 }
 0x274   :  { %574 = vmatpush.msra.mxu2 %v481_v38  ;;  %v558_v38 = vpop.permute.xlu0 %557 }
 0x276   :  { %575 = vmatpush.msra.mxu2 %v480_v17 }
 0x278   :  { %576 = vmatpush.msra.mxu2 %v479_v22  ;;  %v554_v13 = vpop.permute.xlu1 %553 }
 0x27a   :  { %577 = vmatpush.msra.mxu2 %v478_v24 }
 0x27c   :  { %578 = vmatpush.msra.mxu2 %v477_v27  ;;  %v538_v25 = vpop.permute.xlu0 %537 }
 0x27e   :  { %579 = vmatpush.msra.mxu2 %v476_v35  ;;  %v530_v35 = vpop.permute.xlu2 %529 }
 0x280   :  { %580 = vmatpush.msra.mxu2 %v475_v39  ;;  %v546_v15 = vpop.permute.xlu1 %545 }
 0x282   :  { %581 = vmatpush.msra.mxu2 %v474_v47 }
 0x284   :  { %582 = vmatpush.msra.mxu2 %v473_v26 }
 0x286   :  { %583 = vmatpush.msra.mxu2 %v472_v20  ;;  %v526_v20 = vpop.permute.xlu0 %525 }
 0x287   :  { %584 = vmatmul.f32.vlgmr.msra.gmra.mxu2 %v488_v50 }
 0x288   :  { %v534_v31 = vpop.permute.xlu1 %533 }
 0x28f   :  { %587 = vmatmul.f32.gmra.mxu2 %v489_v18 }
 0x297   :  { %590 = vmatmul.f32.gmra.mxu2 %v490_v19  ;;  %v522_v19 = vpop.permute.xlu1 %521 }
 0x29f   :  { %593 = vmatmul.f32.gmra.mxu2 %v491_v33  ;;  %v518_v33 = vpop.permute.xlu2 %517 }
 0x2a7   :  { %596 = vmatmul.f32.gmra.mxu2 %v492_v51 }
 0x2ad   :  { %v303_v53 = vpop.f32.mrf.mxu0 }
 0x2ae   :  { %v304_v55 = vadd.f32 %v303_v53, %v285_v52 }
 0x2af   :  { %599 = vmatmul.f32.gmra.mxu2 %v493_v54 }
 0x2b0   :  { %v1697_v44 = vmax.f32 %v304_v55, 0.0 }
 0x2b2   :  { %1135 = vrot.lane.b32.xlu0 %v1697_v44, %s1387_s5 }
 0x2b5   :  { %v306_v40 = vpop.f32.mrf.mxu0 }
 0x2b6   :  { %v307_v56 = vadd.f32 %v306_v40, %v285_v52 }
 0x2b7   :  { %602 = vmatmul.f32.gmra.mxu2 %v494_v37 }
 0x2b8   :  { %v1700_v48 = vmax.f32 %v307_v56, 0.0 }
 0x2ba   :  { %1171 = vrot.lane.b32.xlu1 %v1700_v48, %s1388_s23  ;;  %1137 = vrot.lane.b32.xlu0 %v1700_v48, %s1387_s5 }
 0x2bf   :  { %605 = vmatmul.f32.gmra.mxu2 %v495_v30  ;;  %v514_v30 = vpop.permute.xlu0 %513 }
 0x2c2   :  { %1169 = vrot.lane.b32.xlu0 %v1697_v44, %s1388_s23 }
 0x2c7   :  { %608 = vmatmul.f32.gmra.mxu2 %v496_v58 }
 0x2cf   :  { %611 = vmatmul.f32.gmra.mxu2 %v497_v59 }
 0x2d7   :  { %614 = vmatmul.f32.gmra.mxu2 %v498_v60  ;;  %v510_v60 = vpop.permute.xlu1 %509 }
 0x2df   :  { %617 = vmatmul.f32.gmra.mxu2 %v499_v61  ;;  %v506_v61 = vpop.permute.xlu2 %505 }
 0x2e7   :  { %620 = vmatmul.f32.gmra.mxu2 %v500_v62 }
 0x2ef   :  { %623 = vmatmul.f32.gmra.mxu2 %v501_v63 }
 0x2f7   :  { %626 = vmatmul.f32.gmra.mxu2 %v502_v1 }
 0x2ff   :  { %629 = vmatmul.f32.gmra.mxu2 %v503_v2 }
 0x30a   :  { %v1705_v3 = vpop.f32.mrf.mxu2 }
 0x30b   :  { %v586_v1 = vadd.f32 %v1705_v3, %v506_v61  ;;  %v655_v3 = vld [vmem:[#allocation7 + $0x130] sm:$0xff] }
 0x312   :  { %v1707_v0 = vpop.f32.mrf.mxu2 }
 0x313   :  { %v589_v62 = vadd.f32 %v1707_v0, %v510_v60  ;;  %v653_v0 = vld [vmem:[#allocation7 + $0x120] sm:$0xff] }
 0x31a   :  { %v591_v4 = vpop.f32.mrf.mxu2 }
 0x31b   :  { %v592_v58 = vadd.f32 %v591_v4, %v514_v30  ;;  %v650_v4 = vld [vmem:[#allocation7 + $0x108] sm:$0xff] }
 0x31d   :  { %v635_v2 = vmax.f32 %v592_v58, 0.0 }
 0x322   :  { %v594_v28 = vpop.f32.mrf.mxu2 }
 0x323   :  { %v595_v40 = vadd.f32 %v594_v28, %v518_v33  ;;  %v649_v28 = vld [vmem:[#allocation7 + $0x100] sm:$0xff] }
 0x325   :  { %v636_v63 = vmax.f32 %v595_v40, 0.0 }
 0x32a   :  { %v597_v5 = vpop.f32.mrf.mxu2 }
 0x32b   :  { %v598_v55 = vadd.f32 %v597_v5, %v522_v19  ;;  %v634_v5 = vmax.f32 %v589_v62, 0.0 }
 0x32d   :  { %v637_v59 = vmax.f32 %v598_v55, 0.0 }
 0x332   :  { %v600_v57 = vpop.f32.mrf.mxu2 }
 0x333   :  { %v601_v54 = vadd.f32 %v600_v57, %v526_v20  ;;  %v633_v57 = vmax.f32 %v586_v1, 0.0 }
 0x335   :  { %v638_v56 = vmax.f32 %v601_v54, 0.0 }
 0x33a   :  { %v603_v6 = vpop.f32.mrf.mxu2 }
 0x33b   :  { %v604_v51 = vadd.f32 %v603_v6, %v530_v35  ;;  %v651_v6 = vld [vmem:[#allocation7 + $0x110] sm:$0xff]  ;;  %v723_v35 = vpop.permute.xlu1 %722 }
 0x33d   :  { %v639_v37 = vmax.f32 %v604_v51, 0.0 }
 0x342   :  { %v606_v14 = vpop.f32.mrf.mxu2 }
 0x343   :  { %v607_v50 = vadd.f32 %v606_v14, %v534_v31  ;;  %v652_v14 = vld [vmem:[#allocation7 + $0x118] sm:$0xff] }
 0x345   :  { %v640_v53 = vmax.f32 %v607_v50, 0.0 }
 0x34a   :  { %v609_v34 = vpop.f32.mrf.mxu2 }
 0x34b   :  { %v610_v49 = vadd.f32 %v609_v34, %v538_v25  ;;  %v654_v34 = vld [vmem:[#allocation7 + $0x128] sm:$0xff] }
 0x34d   :  { %v641_v52 = vmax.f32 %v610_v49, 0.0 }
 0x352   :  { %v612_v32 = vpop.f32.mrf.mxu2 }
 0x353   :  { %v613_v46 = vadd.f32 %v612_v32, %v542_v16  ;;  %v656_v32 = vld [vmem:[#allocation7 + $0x138] sm:$0xff] }
 0x355   :  { %v642_v18 = vmax.f32 %v613_v46, 0.0 }
 0x35a   :  { %v615_v7 = vpop.f32.mrf.mxu2 }
 0x35b   :  { %v616_v39 = vadd.f32 %v615_v7, %v546_v15  ;;  %v657_v7 = vld [vmem:[#allocation7 + $0x140] sm:$0xff] }
 0x35d   :  { %v643_v26 = vmax.f32 %v616_v39, 0.0  ;;  %v727_v39 = vpop.permute.xlu0 %726 }
 0x362   :  { %v618_v8 = vpop.f32.mrf.mxu2 }
 0x363   :  { %v619_v41 = vadd.f32 %v618_v8, %v550_v29  ;;  %v658_v8 = vld [vmem:[#allocation7 + $0x148] sm:$0xff]  ;;  %v664_v29 = vld [vmem:[#allocation7 + $0x178] sm:$0xff] }
 0x365   :  { %v644_v47 = vmax.f32 %v619_v41, 0.0  ;;  %v719_v41 = vpop.permute.xlu2 %718  ;;  %v707_v49 = vpop.permute.xlu0 %706 }
 0x36a   :  { %v621_v11 = vpop.f32.mrf.mxu2 }
 0x36b   :  { %v622_v42 = vadd.f32 %v621_v11, %v554_v13  ;;  %v661_v11 = vld [vmem:[#allocation7 + $0x160] sm:$0xff]  ;;  %v663_v13 = vld [vmem:[#allocation7 + $0x170] sm:$0xff] }
 0x36d   :  { %v645_v45 = vmax.f32 %v622_v42, 0.0  ;;  %v711_v46 = vpop.permute.xlu2 %710 }
 0x372   :  { %v624_v12 = vpop.f32.mrf.mxu2 }
 0x373   :  { %v625_v23 = vadd.f32 %v624_v12, %v558_v38  ;;  %v662_v12 = vld [vmem:[#allocation7 + $0x168] sm:$0xff] }
 0x375   :  { %v646_v43 = vmax.f32 %v625_v23, 0.0  ;;  %v699_v19 = vpop.permute.xlu2 %698 }
 0x37a   :  { %v627_v36 = vpop.f32.mrf.mxu2 }
 0x37b   :  { %v628_v21 = vadd.f32 %v627_v36, %v562_v10  ;;  %v660_v10 = vld [vmem:[#allocation7 + $0x158] sm:$0xff] }
 0x37d   :  { %v647_v27 = vmax.f32 %v628_v21, 0.0  ;;  %v687_v60 = vpop.permute.xlu2 %686 }
 0x382   :  { %v630_v17 = vpop.f32.mrf.mxu2 }
 0x383   :  { %v631_v22 = vadd.f32 %v630_v17, %v566_v9  ;;  %v659_v9 = vld [vmem:[#allocation7 + $0x150] sm:$0xff] }
 0x385   :  { %v648_v24 = vmax.f32 %v631_v22, 0.0 }
 0x387   :  { %729 = vmatpush.msra.mxu3 %v648_v24 }
 0x389   :  { %730 = vmatpush.msra.mxu3 %v647_v27 }
 0x38b   :  { %731 = vmatpush.msra.mxu3 %v646_v43 }
 0x38d   :  { %732 = vmatpush.msra.mxu3 %v645_v45  ;;  %v715_v45 = vpop.permute.xlu1 %714 }
 0x38f   :  { %733 = vmatpush.msra.mxu3 %v644_v47 }
 0x391   :  { %734 = vmatpush.msra.mxu3 %v643_v26 }
 0x393   :  { %735 = vmatpush.msra.mxu3 %v642_v18 }
 0x395   :  { %736 = vmatpush.msra.mxu3 %v641_v52  ;;  %v703_v26 = vpop.permute.xlu1 %702 }
 0x397   :  { %737 = vmatpush.msra.mxu3 %v640_v53  ;;  %v695_v53 = vpop.permute.xlu0 %694 }
 0x399   :  { %738 = vmatpush.msra.mxu3 %v639_v37 }
 0x39b   :  { %739 = vmatpush.msra.mxu3 %v638_v56 }
 0x39d   :  { %740 = vmatpush.msra.mxu3 %v637_v59  ;;  %v691_v40 = vpop.permute.xlu1 %690 }
 0x39f   :  { %741 = vmatpush.msra.mxu3 %v636_v63 }
 0x3a1   :  { %742 = vmatpush.msra.mxu3 %v635_v2  ;;  %v683_v2 = vpop.permute.xlu0 %682 }
 0x3a3   :  { %743 = vmatpush.msra.mxu3 %v634_v5 }
 0x3a5   :  { %744 = vmatpush.msra.mxu3 %v633_v57 }
 0x3a6   :  { %745 = vmatmul.f32.vlgmr.msra.gmra.mxu3 %v649_v28  ;;  %v679_v28 = vpop.permute.xlu1 %678 }
 0x3ae   :  { %748 = vmatmul.f32.gmra.mxu3 %v650_v4 }
 0x3b6   :  { %751 = vmatmul.f32.gmra.mxu3 %v651_v6 }
 0x3be   :  { %754 = vmatmul.f32.gmra.mxu3 %v652_v14 }
 0x3c6   :  { %757 = vmatmul.f32.gmra.mxu3 %v653_v0 }
 0x3ce   :  { %760 = vmatmul.f32.gmra.mxu3 %v654_v34  ;;  %v675_v34 = vpop.permute.xlu2 %674 }
 0x3d6   :  { %763 = vmatmul.f32.gmra.mxu3 %v655_v3 }
 0x3de   :  { %766 = vmatmul.f32.gmra.mxu3 %v656_v32 }
 0x3e6   :  { %769 = vmatmul.f32.gmra.mxu3 %v657_v7 }
 0x3ee   :  { %772 = vmatmul.f32.gmra.mxu3 %v658_v8 }
 0x3f6   :  { %775 = vmatmul.f32.gmra.mxu3 %v659_v9  ;;  %v671_v9 = vpop.permute.xlu0 %670 }
 0x3fe   :  { %778 = vmatmul.f32.gmra.mxu3 %v660_v10 }
 0x406   :  { %781 = vmatmul.f32.gmra.mxu3 %v661_v11 }
 0x40e   :  { %784 = vmatmul.f32.gmra.mxu3 %v662_v12  ;;  %v667_v12 = vpop.permute.xlu1 %666 }
 0x416   :  { %787 = vmatmul.f32.gmra.mxu3 %v663_v13 }
 0x41e   :  { %790 = vmatmul.f32.gmra.mxu3 %v664_v29 }
 0x429   :  { %v1711_v36 = vpop.f32.mrf.mxu3 }
 0x42a   :  { %v747_v13 = vadd.f32 %v1711_v36, %v667_v12  ;;  %v816_v36 = vld [vmem:[#allocation7 + $0x1b0] sm:$0xff] }
 0x431   :  { %v1713_v38 = vpop.f32.mrf.mxu3 }
 0x432   :  { %v750_v10 = vadd.f32 %v1713_v38, %v671_v9  ;;  %v814_v38 = vld [vmem:[#allocation7 + $0x1a0] sm:$0xff] }
 0x439   :  { %v752_v15 = vpop.f32.mrf.mxu3 }
 0x43a   :  { %v753_v7 = vadd.f32 %v752_v15, %v675_v34  ;;  %v811_v15 = vld [vmem:[#allocation7 + $0x188] sm:$0xff] }
 0x43c   :  { %v796_v29 = vmax.f32 %v753_v7, 0.0 }
 0x441   :  { %v755_v16 = vpop.f32.mrf.mxu3 }
 0x442   :  { %v756_v3 = vadd.f32 %v755_v16, %v679_v28  ;;  %v810_v16 = vld [vmem:[#allocation7 + $0x180] sm:$0xff] }
 0x444   :  { %v797_v11 = vmax.f32 %v756_v3, 0.0 }
 0x449   :  { %v758_v17 = vpop.f32.mrf.mxu3 }
 0x44a   :  { %v759_v14 = vadd.f32 %v758_v17, %v683_v2  ;;  %v795_v17 = vmax.f32 %v750_v10, 0.0 }
 0x44c   :  { %v798_v8 = vmax.f32 %v759_v14, 0.0 }
 0x451   :  { %v761_v21 = vpop.f32.mrf.mxu3 }
 0x452   :  { %v762_v4 = vadd.f32 %v761_v21, %v687_v60  ;;  %v794_v21 = vmax.f32 %v747_v13, 0.0 }
 0x454   :  { %v799_v32 = vmax.f32 %v762_v4, 0.0 }
 0x459   :  { %v764_v22 = vpop.f32.mrf.mxu3 }
 0x45a   :  { %v765_v5 = vadd.f32 %v764_v22, %v691_v40  ;;  %v812_v22 = vld [vmem:[#allocation7 + $0x190] sm:$0xff] }
 0x45c   :  { %v800_v0 = vmax.f32 %v765_v5, 0.0 }
 0x461   :  { %v767_v23 = vpop.f32.mrf.mxu3 }
 0x462   :  { %v768_v63 = vadd.f32 %v767_v23, %v695_v53  ;;  %v813_v23 = vld [vmem:[#allocation7 + $0x198] sm:$0xff]  ;;  %v888_v53 = vpop.permute.xlu2 %887 }
 0x464   :  { %v801_v6 = vmax.f32 %v768_v63, 0.0 }
 0x469   :  { %v770_v24 = vpop.f32.mrf.mxu3 }
 0x46a   :  { %v771_v61 = vadd.f32 %v770_v24, %v699_v19  ;;  %v815_v24 = vld [vmem:[#allocation7 + $0x1a8] sm:$0xff]  ;;  %v876_v40 = vpop.permute.xlu2 %875 }
 0x46c   :  { %v802_v57 = vmax.f32 %v771_v61, 0.0 }
 0x471   :  { %v773_v25 = vpop.f32.mrf.mxu3 }
 0x472   :  { %v774_v58 = vadd.f32 %v773_v25, %v703_v26  ;;  %v817_v25 = vld [vmem:[#allocation7 + $0x1b8] sm:$0xff]  ;;  %v868_v60 = vpop.permute.xlu2 %867 }
 0x474   :  { %v803_v1 = vmax.f32 %v774_v58, 0.0 }
 0x479   :  { %v776_v42 = vpop.f32.mrf.mxu3 }
 0x47a   :  { %v777_v56 = vadd.f32 %v776_v42, %v707_v49  ;;  %v818_v42 = vld [vmem:[#allocation7 + $0x1c0] sm:$0xff]  ;;  %v856_v28 = vpop.permute.xlu2 %855 }
 0x47c   :  { %v804_v62 = vmax.f32 %v777_v56, 0.0 }
 0x481   :  { %v779_v27 = vpop.f32.mrf.mxu3 }
 0x482   :  { %v780_v55 = vadd.f32 %v779_v27, %v711_v46  ;;  %v819_v27 = vld [vmem:[#allocation7 + $0x1c8] sm:$0xff]  ;;  %v844_v12 = vpop.permute.xlu2 %843 }
 0x484   :  { %v805_v59 = vmax.f32 %v780_v55, 0.0 }
 0x489   :  { %v782_v31 = vpop.f32.mrf.mxu3 }
 0x48a   :  { %v783_v52 = vadd.f32 %v782_v31, %v715_v45  ;;  %v820_v31 = vld [vmem:[#allocation7 + $0x1d0] sm:$0xff]  ;;  %v825_v45 = vld [vmem:[#allocation7 + $0x1f8] sm:$0xff] }
 0x48c   :  { %v806_v30 = vmax.f32 %v783_v52, 0.0 }
 0x491   :  { %v785_v43 = vpop.f32.mrf.mxu3 }
 0x492   :  { %v786_v33 = vadd.f32 %v785_v43, %v719_v41  ;;  %v822_v41 = vld [vmem:[#allocation7 + $0x1e0] sm:$0xff]  ;;  %v823_v43 = vld [vmem:[#allocation7 + $0x1e8] sm:$0xff] }
 0x494   :  { %v807_v37 = vmax.f32 %v786_v33, 0.0 }
 0x499   :  { %v788_v47 = vpop.f32.mrf.mxu3 }
 0x49a   :  { %v789_v50 = vadd.f32 %v788_v47, %v723_v35  ;;  %v821_v35 = vld [vmem:[#allocation7 + $0x1d8] sm:$0xff] }
 0x49c   :  { %v808_v54 = vmax.f32 %v789_v50, 0.0 }
 0x4a1   :  { %v791_v20 = vpop.f32.mrf.mxu3 }
 0x4a2   :  { %v792_v18 = vadd.f32 %v791_v20, %v727_v39  ;;  %v824_v39 = vld [vmem:[#allocation7 + $0x1f0] sm:$0xff] }
 0x4a4   :  { %v809_v51 = vmax.f32 %v792_v18, 0.0 }
 0x4a6   :  { %890 = vmatpush.msra.mxu0 %v809_v51 }
 0x4a8   :  { %891 = vmatpush.msra.mxu0 %v808_v54 }
 0x4aa   :  { %892 = vmatpush.msra.mxu0 %v807_v37  ;;  %v880_v37 = vpop.permute.xlu1 %879 }
 0x4ac   :  { %893 = vmatpush.msra.mxu0 %v806_v30  ;;  %v884_v30 = vpop.permute.xlu0 %883 }
 0x4ae   :  { %894 = vmatpush.msra.mxu0 %v805_v59 }
 0x4b0   :  { %895 = vmatpush.msra.mxu0 %v804_v62 }
 0x4b2   :  { %896 = vmatpush.msra.mxu0 %v803_v1  ;;  %v872_v59 = vpop.permute.xlu1 %871 }
 0x4b4   :  { %897 = vmatpush.msra.mxu0 %v802_v57  ;;  %v864_v61 = vpop.permute.xlu0 %863 }
 0x4b6   :  { %898 = vmatpush.msra.mxu0 %v801_v6 }
 0x4b8   :  { %899 = vmatpush.msra.mxu0 %v800_v0 }
 0x4ba   :  { %900 = vmatpush.msra.mxu0 %v799_v32  ;;  %v860_v57 = vpop.permute.xlu1 %859 }
 0x4bc   :  { %901 = vmatpush.msra.mxu0 %v798_v8  ;;  %v852_v34 = vpop.permute.xlu0 %851 }
 0x4be   :  { %902 = vmatpush.msra.mxu0 %v797_v11 }
 0x4c0   :  { %903 = vmatpush.msra.mxu0 %v796_v29 }
 0x4c2   :  { %904 = vmatpush.msra.mxu0 %v795_v17  ;;  %v848_v11 = vpop.permute.xlu1 %847 }
 0x4c4   :  { %905 = vmatpush.msra.mxu0 %v794_v21 }
 0x4c5   :  { %906 = vmatmul.f32.vlgmr.msra.gmra.mxu0 %v810_v16  ;;  %v840_v16 = vpop.permute.xlu0 %839 }
 0x4cd   :  { %909 = vmatmul.f32.gmra.mxu0 %v811_v15 }
 0x4d5   :  { %912 = vmatmul.f32.gmra.mxu0 %v812_v22 }
 0x4dd   :  { %915 = vmatmul.f32.gmra.mxu0 %v813_v23 }
 0x4e5   :  { %918 = vmatmul.f32.gmra.mxu0 %v814_v38 }
 0x4ed   :  { %921 = vmatmul.f32.gmra.mxu0 %v815_v24 }
 0x4f5   :  { %924 = vmatmul.f32.gmra.mxu0 %v816_v36 }
 0x4fd   :  { %927 = vmatmul.f32.gmra.mxu0 %v817_v25  ;;  %v836_v25 = vpop.permute.xlu1 %835 }
 0x505   :  { %930 = vmatmul.f32.gmra.mxu0 %v818_v42  ;;  %v832_v42 = vpop.permute.xlu2 %831 }
 0x50d   :  { %933 = vmatmul.f32.gmra.mxu0 %v819_v27 }
 0x515   :  { %936 = vmatmul.f32.gmra.mxu0 %v820_v31 }
 0x51d   :  { %939 = vmatmul.f32.gmra.mxu0 %v821_v35 }
 0x525   :  { %942 = vmatmul.f32.gmra.mxu0 %v822_v41 }
 0x52d   :  { %945 = vmatmul.f32.gmra.mxu0 %v823_v43  ;;  %v828_v43 = vpop.permute.xlu0 %827 }
 0x535   :  { %948 = vmatmul.f32.gmra.mxu0 %v824_v39 }
 0x53d   :  { %951 = vmatmul.f32.gmra.mxu0 %v825_v45 }
 0x542   :  { %v1717_v46 = vpop.f32.mrf.mxu0 }
 0x543   :  { %v908_v39 = vadd.f32 %v1717_v46, %v828_v43  ;;  %v977_v46 = vld [vmem:[#allocation7 + $0x230] sm:$0xff] }
 0x54a   :  { %v1719_v47 = vpop.f32.mrf.mxu0 }
 0x54b   :  { %v911_v35 = vadd.f32 %v1719_v47, %v832_v42  ;;  %v975_v47 = vld [vmem:[#allocation7 + $0x220] sm:$0xff] }
 0x552   :  { %v1721_v49 = vpop.f32.mrf.mxu0 }
 0x553   :  { %v914_v27 = vadd.f32 %v1721_v49, %v836_v25  ;;  %v973_v49 = vld [vmem:[#allocation7 + $0x210] sm:$0xff] }
 0x555   :  { %v957_v45 = vmax.f32 %v914_v27, 0.0 }
 0x55a   :  { %v916_v26 = vpop.f32.mrf.mxu0 }
 0x55b   :  { %v917_v24 = vadd.f32 %v916_v26, %v840_v16  ;;  %v955_v26 = vmax.f32 %v908_v39, 0.0 }
 0x55d   :  { %v958_v41 = vmax.f32 %v917_v24, 0.0 }
 0x562   :  { %v919_v20 = vpop.f32.mrf.mxu0 }
 0x563   :  { %v920_v23 = vadd.f32 %v919_v20, %v844_v12  ;;  %v956_v20 = vmax.f32 %v911_v35, 0.0 }
 0x565   :  { %v959_v31 = vmax.f32 %v920_v23, 0.0 }
 0x56a   :  { %v922_v50 = vpop.f32.mrf.mxu0 }
 0x56b   :  { %v923_v15 = vadd.f32 %v922_v50, %v848_v11  ;;  %v971_v50 = vld [vmem:[#allocation7 + $0x200] sm:$0xff] }
 0x56d   :  { %v960_v36 = vmax.f32 %v923_v15, 0.0 }
 0x572   :  { %v925_v18 = vpop.f32.mrf.mxu0 }
 0x573   :  { %v926_v17 = vadd.f32 %v925_v18, %v852_v34  ;;  %v972_v18 = vld [vmem:[#allocation7 + $0x208] sm:$0xff] }
 0x575   :  { %v961_v38 = vmax.f32 %v926_v17, 0.0 }
 0x57a   :  { %v928_v19 = vpop.f32.mrf.mxu0 }
 0x57b   :  { %v929_v13 = vadd.f32 %v928_v19, %v856_v28  ;;  %v974_v19 = vld [vmem:[#allocation7 + $0x218] sm:$0xff] }
 0x57d   :  { %v962_v22 = vmax.f32 %v929_v13, 0.0 }
 0x582   :  { %v931_v33 = vpop.f32.mrf.mxu0 }
 0x583   :  { %v932_v9 = vadd.f32 %v931_v33, %v860_v57  ;;  %v976_v33 = vld [vmem:[#allocation7 + $0x228] sm:$0xff]  ;;  %v985_v57 = vld [vmem:[#allocation7 + $0x270] sm:$0xff] }
 0x585   :  { %v963_v21 = vmax.f32 %v932_v9, 0.0 }
 0x58a   :  { %v934_v51 = vpop.f32.mrf.mxu0 }
 0x58b   :  { %v935_v7 = vadd.f32 %v934_v51, %v864_v61  ;;  %v978_v51 = vld [vmem:[#allocation7 + $0x238] sm:$0xff] }
 0x58d   :  { %v964_v29 = vmax.f32 %v935_v7, 0.0 }
 0x592   :  { %v937_v52 = vpop.f32.mrf.mxu0 }
 0x593   :  { %v938_v3 = vadd.f32 %v937_v52, %v868_v60  ;;  %v979_v52 = vld [vmem:[#allocation7 + $0x240] sm:$0xff] }
 0x595   :  { %v965_v10 = vmax.f32 %v938_v3, 0.0 }
 0x59a   :  { %v940_v54 = vpop.f32.mrf.mxu0 }
 0x59b   :  { %v941_v14 = vadd.f32 %v940_v54, %v872_v59  ;;  %v980_v54 = vld [vmem:[#allocation7 + $0x248] sm:$0xff] }
 0x59d   :  { %v966_v8 = vmax.f32 %v941_v14, 0.0  ;;  %v986_v14 = vld [vmem:[#allocation7 + $0x278] sm:$0xff] }
 0x5a2   :  { %v943_v55 = vpop.f32.mrf.mxu0 }
 0x5a3   :  { %v944_v4 = vadd.f32 %v943_v55, %v876_v40  ;;  %v982_v55 = vld [vmem:[#allocation7 + $0x258] sm:$0xff]  ;;  %v1001_v40 = vpop.permute.xlu1 %1000 }
 0x5a5   :  { %v967_v32 = vmax.f32 %v944_v4, 0.0 }
 0x5aa   :  { %v946_v56 = vpop.f32.mrf.mxu0 }
 0x5ab   :  { %v947_v2 = vadd.f32 %v946_v56, %v880_v37  ;;  %v997_v37 = vpop.permute.xlu2 %996  ;;  %v993_v59 = vpop.permute.xlu1 %992 }
 0x5ad   :  { %v968_v0 = vmax.f32 %v947_v2, 0.0 }
 0x5b2   :  { %v949_v58 = vpop.f32.mrf.mxu0 }
 0x5b3   :  { %v950_v63 = vadd.f32 %v949_v58, %v884_v30  ;;  %v983_v30 = vld [vmem:[#allocation7 + $0x260] sm:$0xff]  ;;  %v989_v58 = vpop.permute.xlu2 %988 }
 0x5b5   :  { %v969_v6 = vmax.f32 %v950_v63, 0.0  ;;  %v984_v63 = vld [vmem:[#allocation7 + $0x268] sm:$0xff] }
 0x5ba   :  { %v952_v62 = vpop.f32.mrf.mxu0 }
 0x5bb   :  { %v953_v1 = vadd.f32 %v952_v62, %v888_v53  ;;  %v981_v53 = vld [vmem:[#allocation7 + $0x250] sm:$0xff]  ;;  %v1005_v9 = vpop.permute.xlu2 %1004 }
 0x5bd   :  { %v970_v5 = vmax.f32 %v953_v1, 0.0 }
 0x5bf   :  { %1041 = vmatpush.msrb.mxu1 %v970_v5 }
 0x5c1   :  { %1042 = vmatpush.msrb.mxu1 %v969_v6 }
 0x5c3   :  { %1043 = vmatpush.msrb.mxu1 %v968_v0  ;;  %v1136_v0 = vpop.permute.xlu0 %1135 }
 0x5c5   :  { %1044 = vmatpush.msrb.mxu1 %v967_v32 }
 0x5c7   :  { %1045 = vmatpush.msrb.mxu1 %v966_v8 }
 0x5c9   :  { %1046 = vmatpush.msrb.mxu1 %v965_v10 }
 0x5cb   :  { %1047 = vmatpush.msrb.mxu1 %v964_v29  ;;  %v1138_v7 = vpop.permute.xlu0 %1137 }
 0x5cd   :  { %1048 = vmatpush.msrb.mxu1 %v963_v21 }
 0x5cf   :  { %1049 = vmatpush.msrb.mxu1 %v962_v22 }
 0x5d1   :  { %1050 = vmatpush.msrb.mxu1 %v961_v38 }
 0x5d3   :  { %1051 = vmatpush.msrb.mxu1 %v960_v36  ;;  %v1170_v13 = vpop.permute.xlu0 %1169 }
 0x5d5   :  { %1052 = vmatpush.msrb.mxu1 %v959_v31 }
 0x5d7   :  { %1053 = vmatpush.msrb.mxu1 %v958_v41 }
 0x5d9   :  { %1054 = vmatpush.msrb.mxu1 %v957_v45 }
 0x5db   :  { %1055 = vmatpush.msrb.mxu1 %v956_v20 }
 0x5dd   :  { %1056 = vmatpush.msrb.mxu1 %v955_v26 }
 0x5de   :  { %1057 = vmatmul.f32.vlgmr.msrb.gmra.mxu1 %v971_v50 }
 0x5e6   :  { %1060 = vmatmul.f32.gmra.mxu1 %v972_v18 }
 0x5ee   :  { %1063 = vmatmul.f32.gmra.mxu1 %v973_v49 }
 0x5f6   :  { %1066 = vmatmul.f32.gmra.mxu1 %v974_v19 }
 0x5fe   :  { %1069 = vmatmul.f32.gmra.mxu1 %v975_v47 }
 0x606   :  { %1072 = vmatmul.f32.gmra.mxu1 %v976_v33 }
 0x60e   :  { %1075 = vmatmul.f32.gmra.mxu1 %v977_v46 }
 0x616   :  { %1077 = vmatmul.f32.gmra.mxu1 %v978_v51 }
 0x61e   :  { %1079 = vmatmul.f32.gmra.mxu1 %v979_v52 }
 0x626   :  { %1081 = vmatmul.f32.gmra.mxu1 %v980_v54 }
 0x62e   :  { %1083 = vmatmul.f32.gmra.mxu1 %v981_v53 }
 0x636   :  { %1085 = vmatmul.f32.gmra.mxu1 %v982_v55 }
 0x63e   :  { %1087 = vmatmul.f32.gmra.mxu1 %v983_v30 }
 0x646   :  { %1089 = vmatmul.f32.gmra.mxu1 %v984_v63 }
 0x64e   :  { %1091 = vmatmul.f32.gmra.mxu1 %v985_v57 }
 0x656   :  { %1093 = vmatmul.f32.gmra.mxu1 %v986_v14 }
 0x65b   :  { %v1058_v56 = vpop.f32.mrf.mxu1 }
 0x65c   :  { %v1059_v61 = vadd.f32 %v1058_v56, %v989_v58 }
 0x65e   :  { %v1096_v2 = vmax.f32 %v1059_v61, 0.0 }
 0x663   :  { %v1061_v60 = vpop.f32.mrf.mxu1 }
 0x664   :  { %v1062_v62 = vadd.f32 %v1061_v60, %v993_v59 }
 0x666   :  { %v1097_v1 = vmax.f32 %v1062_v62, 0.0 }
 0x668   :  { %1123 = vmatpush.msrb.mxu2 %v1097_v1 }
 0x66a   :  { %1124 = vmatpush.msrb.mxu2 %v1096_v2 }
 0x66b   :  { %v1064_v5 = vpop.f32.mrf.mxu1  ;;  %1225 = vmatmul.msk.f32.vlgmr.msrb.gmra.mxu2 %vm1102_vm1, %v1697_v44  ;;  %v1009_v44 = vpop.permute.xlu1 %1008 }
 0x66c   :  { %v1065_v4 = vadd.f32 %v1064_v5, %v997_v37 }
 0x66e   :  { %v1098_v3 = vmax.f32 %v1065_v4, 0.0 }
 0x673   :  { %v1067_v28 = vpop.f32.mrf.mxu1  ;;  %1226 = vmatmul.msk.f32.gmra.mxu2 %vm1102_vm1, %v1700_v48  ;;  %v1172_v29 = vpop.permute.xlu1 %1171 }
 0x674   :  { %v1068_v6 = vadd.f32 %v1067_v28, %v1001_v40 }
 0x676   :  { %v1099_v34 = vmax.f32 %v1068_v6, 0.0 }
 0x678   :  { %1157 = vmatpush.msrb.mxu0 %v1099_v34 }
 0x67a   :  { %1158 = vmatpush.msrb.mxu0 %v1098_v3 }
 0x67b   :  { %v1070_v32 = vpop.f32.mrf.mxu1  ;;  %1227 = vmatmul.msk.f32.vlgmr.msrb.gmra.mxu0 %vm1102_vm1, %v1136_v0 }
 0x67c   :  { %v1071_v48 = vadd.f32 %v1070_v32, %v1005_v9 }
 0x67e   :  { %v1100_v12 = vmax.f32 %v1071_v48, 0.0 }
 0x683   :  { %v1073_v8 = vpop.f32.mrf.mxu1  ;;  %1228 = vmatmul.msk.f32.gmra.mxu0 %vm1102_vm1, %v1138_v7 }
 0x684   :  { %v1074_v10 = vadd.f32 %v1073_v8, %v1009_v44 }
 0x686   :  { %v1101_v11 = vmax.f32 %v1074_v10, 0.0 }
 0x688   :  { %1191 = vmatpush.msra.mxu0 %v1101_v11 }
 0x68a   :  { %1192 = vmatpush.msra.mxu0 %v1100_v12 }
 0x68b   :  { %1229 = vmatmul.msk.f32.vlgmr.msra.gmra.mxu0 %vm1102_vm1, %v1170_v13  ;;  %v1076_v17 = vpop.f32.mrf.mxu1 }
 0x693   :  { %1230 = vmatmul.msk.f32.gmra.mxu0 %vm1102_vm1, %v1172_v29  ;;  %v1078_v21 = vpop.f32.mrf.mxu1 }
 0x69b   :  { %v1080_v16 = vpop.f32.mrf.mxu1 }
 0x6a3   :  { %v1082_v15 = vpop.f32.mrf.mxu1 }
 0x6ab   :  { %v1084_v22 = vpop.f32.mrf.mxu1 }
 0x6b3   :  { %v1086_v23 = vpop.f32.mrf.mxu1 }
 0x6bb   :  { %v1088_v38 = vpop.f32.mrf.mxu1 }
 0x6c3   :  { %v1090_v24 = vpop.f32.mrf.mxu1 }
 0x6cb   :  { %v1092_v36 = vpop.f32.mrf.mxu1 }
 0x6d3   :  { %v1094_v42 = vpop.f32.mrf.mxu1 }
 0x6ee   :  { %v1126_v25 = vpop.f32.mrf.mxu2 }
 0x6ef   :  { %1133 = vst.msk [vmem:[#allocation8] sm:$0xff] %vm1132_vm2, %v1126_v25 }
 0x6f6   :  { %v1129_v27 = vpop.f32.mrf.mxu2 }
 0x6f7   :  { %1134 = vst.msk [vmem:[#allocation8 + $0x8] sm:$0xff] %vm1132_vm2, %v1129_v27 }
 0x6f8   :  { %v1160_v31 = vpop.f32.mrf.mxu0 }
 0x6f9   :  { %1167 = vst.msk [vmem:[#allocation8 + $0x10] sm:$0xff] %vm1132_vm2, %v1160_v31 }
 0x700   :  { %v1163_v35 = vpop.f32.mrf.mxu0 }
 0x701   :  { %1168 = vst.msk [vmem:[#allocation8 + $0x18] sm:$0xff] %vm1132_vm2, %v1163_v35 }
 0x708   :  { %v1194_v41 = vpop.f32.mrf.mxu0 }
 0x709   :  { %1201 = vst.msk [vmem:[#allocation8 + $0x20] sm:$0xff] %vm1132_vm2, %v1194_v41 }
 0x710   :  { %v1197_v43 = vpop.f32.mrf.mxu0 }
 0x711   :  { %1202 = vst.msk [vmem:[#allocation8 + $0x28] sm:$0xff] %vm1132_vm2, %v1197_v43 }
 0x712   :  { %1215 = dma.vmem_to_hbm [thread:$0]  %s1208_s24, 768, %s1210_s27, [#allocation4], %s1378_s29, %s1378_s29, %s1379_s30  }
 0x713   :  { %1375 = dma.done.wait [#allocation4], 768  }
 0x714   :  { %1376 = vsyncadd [#allocation4], 4294966528 }
 0x715   :  { %1220 = vsyncpa [#allocation3], 1 }
 0x716   :  { %1221 = vsyncpa [#allocation6], 1 }
 0x717   :  { %1222 = vsyncpa [#allocation4], 1 }

</bundles_post_ra>
